<compile_context>
chip_gen: v5e
topology: v5e:2x2
jax: 0.10.0
libtpu: 0.0.40
codegen_flags: <defaults>
</compile_context>

<pallas_src>
import math

import jax
import jax.numpy as jnp
from jax.experimental import pallas as pl
from jax.experimental.pallas import tpu as pltpu


# ----------------------------- Pallas kernel ------------------------------ #
def encoder_pool_kernel(
    x_ref,        # (Bt, S, H)  token embeddings (word + pos), f32
    addmask_ref,  # (Bt, 1, S)  additive key mask: 0 valid / -1e9 padded, f32
    maskp_ref,    # (Bt, S, 1)  binary pooling mask, f32
    wqkv_ref, bqkv_ref,          # (H, 3H) bf16, (1, 3H) f32
    wo_ref, bo_ref,              # (H, H)  bf16, (1, H)  f32
    ln1_g_ref, ln1_b_ref,        # (1, H)  f32
    w1_ref, b1_ref,              # (H, F)  bf16, (1, F)  f32
    w2_ref, b2_ref,              # (F, H)  bf16, (1, H)  f32
    ln2_g_ref, ln2_b_ref,        # (1, H)  f32
    tok_out_ref,  # (Bt, S, H)  token_embeddings, f32
    sent_out_ref  # (Bt, 1, H)  sentence_embedding, f32
):
    Bt, S, H = x_ref.shape
    N = Bt * S

    x = x_ref[...]                       # (Bt, S, H) f32
    x2 = x.reshape(N, H)                 # fat M dimension for the MXU
    xb = x2.astype(jnp.bfloat16)

    def layernorm(h, g, b):              # f32 elementwise (v5e VPU has no bf16)
        mu = jnp.mean(h, axis=-1, keepdims=True)
        d = h - mu
        var = jnp.mean(d * d, axis=-1, keepdims=True)
        return d * jax.lax.rsqrt(var + 1e-12) * g + b

    # --- fused QKV projection: one bf16 MXU matmul, f32 accumulate -------- #
    qkv = jnp.dot(xb, wqkv_ref[...],
                  preferred_element_type=jnp.float32) + bqkv_ref[...]   # (N, 3H)
    scale = 1.0 / math.sqrt(H)
    q = (qkv[:, 0:H] * scale).astype(jnp.bfloat16).reshape(Bt, S, H)
    k = qkv[:, H:2 * H].astype(jnp.bfloat16).reshape(Bt, S, H)
    v = qkv[:, 2 * H:3 * H].astype(jnp.bfloat16).reshape(Bt, S, H)

    # --- single-head self-attention (batched over the Bt rows) ------------ #
    scores = jnp.einsum('bqd,bkd->bqk', q, k,
                        preferred_element_type=jnp.float32)             # (Bt,S,S)
    scores = scores + addmask_ref[...]       # additive mask precomputed in wrapper

    m = jnp.max(scores, axis=-1, keepdims=True)
    p = jnp.exp(scores - m)
    p = p * pl.reciprocal(jnp.sum(p, axis=-1, keepdims=True), approx=True)  # EUP

    ctx = jnp.einsum('bqk,bkh->bqh', p.astype(jnp.bfloat16), v,
                     preferred_element_type=jnp.float32)                # (Bt,S,H)
    attn = jnp.dot(ctx.reshape(N, H).astype(jnp.bfloat16), wo_ref[...],
                   preferred_element_type=jnp.float32) + bo_ref[...]
    h1 = layernorm(x2 + attn, ln1_g_ref[...], ln1_b_ref[...])           # (N, H) f32

    # --- feed-forward ------------------------------------------------------ #
    ff = jnp.dot(h1.astype(jnp.bfloat16), w1_ref[...],
                 preferred_element_type=jnp.float32) + b1_ref[...]
    ff = jax.nn.gelu(ff, approximate=True)                              # f32 / EUP
    ff = jnp.dot(ff.astype(jnp.bfloat16), w2_ref[...],
                 preferred_element_type=jnp.float32) + b2_ref[...]
    y2 = layernorm(h1 + ff, ln2_g_ref[...], ln2_b_ref[...])             # (N, H)

    y = y2.reshape(Bt, S, H)
    # Token embeddings kept f32 to match the PyTorch module's output dtype;
    # could be emitted bf16 if downstream consumers tolerate it.
    tok_out_ref[...] = y.astype(tok_out_ref.dtype)

    # --- masked mean pooling (the module's forward hot path) -------------- #
    mask_p = maskp_ref[...]                                             # (Bt,S,1)
    sum_emb = jnp.sum(y * mask_p, axis=1, keepdims=True)                # (Bt,1,H)
    sum_mask = jnp.maximum(jnp.sum(mask_p, axis=1, keepdims=True), 1e-9)  # (Bt,1,1)
    sent = sum_emb * pl.reciprocal(sum_mask, approx=True)
    sent_out_ref[...] = sent.astype(sent_out_ref.dtype)


# ------------------------------- wrapper ----------------------------------- #
def _pallas_forward(x, add_mask, mask_p, w, Bt, single_buffer_weights):
    Bp, S, H = x.shape
    F = w["w1"].shape[1]

    def wspec(shape):
        zero_map = lambda b, _n=len(shape): (0,) * _n
        if single_buffer_weights:
            # Constant-index blocks are never re-fetched — don't double-buffer.
            return pl.BlockSpec(shape, zero_map, pipeline_mode=pl.Buffered(1))
        return pl.BlockSpec(shape, zero_map)

    in_specs = [
        pl.BlockSpec((Bt, S, H), lambda b: (b, 0, 0)),   # x
        pl.BlockSpec((Bt, 1, S), lambda b: (b, 0, 0)),   # additive key mask
        pl.BlockSpec((Bt, S, 1), lambda b: (b, 0, 0)),   # pooling mask
        wspec((H, 3 * H)), wspec((1, 3 * H)),            # wqkv, bqkv
        wspec((H, H)), wspec((1, H)),                    # wo, bo
        wspec((1, H)), wspec((1, H)),                    # ln1 gamma, beta
        wspec((H, F)), wspec((1, F)),                    # w1, b1
        wspec((F, H)), wspec((1, H)),                    # w2, b2
        wspec((1, H)), wspec((1, H)),                    # ln2 gamma, beta
    ]
    out_shapes = (
        jax.ShapeDtypeStruct((Bp, S, H), jnp.float32),   # token_embeddings
        jax.ShapeDtypeStruct((Bp, 1, H), jnp.float32),   # sentence_embedding
    )
    out_specs = (
        pl.BlockSpec((Bt, S, H), lambda b: (b, 0, 0)),
        pl.BlockSpec((Bt, 1, H), lambda b: (b, 0, 0)),
    )

    return pl.pallas_call(
        encoder_pool_kernel,
        out_shape=out_shapes,
        grid_spec=pltpu.PrefetchScalarGridSpec(
            num_scalar_prefetch=0,
            grid=(Bp // Bt,),
            in_specs=in_specs,
            out_specs=out_specs,
        ),
        compiler_params=pltpu.CompilerParams(
            dimension_semantics=("parallel",),
            vmem_limit_bytes=48 * 1024 * 1024,
        ),
    )(
        x, add_mask, mask_p,
        w["wqkv"], w["bqkv"], w["wo"], w["bo"],
        w["ln1_g"], w["ln1_b"],
        w["w1"], w["b1"], w["w2"], w["b2"],
        w["ln2_g"], w["ln2_b"],
    )


def transformer_classifier_forward(input_ids, attention_mask, params, *, batch_block=None):
    """Returns a dict mimicking the module's `features` output."""
    B, S = input_ids.shape
    H = params["word_emb"].shape[1]

    # glue: embedding lookups (gather) stay in plain JAX
    # TODO(synk): embedding-table gather has no clean rectangular BlockSpec; kept in JAX.
    x = jnp.take(params["word_emb"], input_ids, axis=0)          # (B, S, H)
    x = (x + params["pos_emb"][None, :S, :]).astype(jnp.float32)

    mask_f = attention_mask.astype(jnp.float32)                  # (B, S)

    # Multiple batch rows per grid step; keep grid extent >= 2 when B allows
    # (v7x dual-TensorCore) while amortizing per-step overhead.
    if batch_block is None:
        batch_block = B if B <= 8 else 8
    Bt = max(1, batch_block)
    Bp = ((B + Bt - 1) // Bt) * Bt
    pad = Bp - B
    if pad:
        x = jnp.pad(x, ((0, pad), (0, 0), (0, 0)))
        mask_f = jnp.pad(mask_f, ((0, pad), (0, 0)))

    add_mask = ((1.0 - mask_f) * (-1e9))[:, None, :]             # (Bp, 1, S)
    mask_p = mask_f[:, :, None]                                  # (Bp, S, 1)

    # bf16 weights for the MXU; biases / LN params stay f32 (added post-accumulate).
    w = {
        "wqkv": jnp.concatenate(
            [params["wq"], params["wk"], params["wv"]], axis=1).astype(jnp.bfloat16),
        "bqkv": jnp.concatenate([params["bq"], params["bk"], params["bv"]], axis=1),
        "wo": params["wo"].astype(jnp.bfloat16), "bo": params["bo"],
        "ln1_g": params["ln1_g"], "ln1_b": params["ln1_b"],
        "w1": params["w1"].astype(jnp.bfloat16), "b1": params["b1"],
        "w2": params["w2"].astype(jnp.bfloat16), "b2": params["b2"],
        "ln2_g": params["ln2_g"], "ln2_b": params["ln2_b"],
    }

    try:
        tok_emb, sent_emb = _pallas_forward(x, add_mask, mask_p, w, Bt, True)
    except Exception:
        # Fallback if pipeline_mode=pl.Buffered(1) is not accepted on this
        # JAX build; semantics are identical, weights just get the default
        # double-buffering.
        tok_emb, sent_emb = _pallas_forward(x, add_mask, mask_p, w, Bt, False)

    tok_emb = tok_emb[:B]
    sent_emb = sent_emb[:B, 0, :]

    return {
        "input_ids": input_ids,
        "attention_mask": attention_mask,
        "token_embeddings": tok_emb,                    # (B, S, H)
        "sentence_embedding": sent_emb,                 # (B, H)
    }


# ------------------------- deterministic parameters ------------------------ #
def init_params(key, vocab=64, max_pos=64, hidden=32, ffn=64):
    ks = jax.random.split(key, 10)
    std = 0.02
    return {
        "word_emb": std * jax.random.normal(ks[0], (vocab, hidden), jnp.float32),
        "pos_emb":  std * jax.random.normal(ks[1], (max_pos, hidden), jnp.float32),
        "wq": std * jax.random.normal(ks[2], (hidden, hidden), jnp.float32),
        "wk": std * jax.random.normal(ks[3], (hidden, hidden), jnp.float32),
        "wv": std * jax.random.normal(ks[4], (hidden, hidden), jnp.float32),
        "wo": std * jax.random.normal(ks[5], (hidden, hidden), jnp.float32),
        "w1": std * jax.random.normal(ks[6], (hidden, ffn), jnp.float32),
        "w2": std * jax.random.normal(ks[7], (ffn, hidden), jnp.float32),
        "bq": jnp.zeros((1, hidden), jnp.float32),
        "bk": jnp.zeros((1, hidden), jnp.float32),
        "bv": jnp.zeros((1, hidden), jnp.float32),
        "bo": jnp.zeros((1, hidden), jnp.float32),
        "b1": jnp.zeros((1, ffn), jnp.float32),
        "b2": jnp.zeros((1, hidden), jnp.float32),
        "ln1_g": jnp.ones((1, hidden), jnp.float32),
        "ln1_b": jnp.zeros((1, hidden), jnp.float32),
        "ln2_g": jnp.ones((1, hidden), jnp.float32),
        "ln2_b": jnp.zeros((1, hidden), jnp.float32),
    }


if __name__ == "__main__":
    key = jax.random.PRNGKey(0)
    B, S, H = 2, 8, 32
    params = init_params(key, vocab=64, max_pos=64, hidden=H, ffn=2 * H)

    k_ids, _ = jax.random.split(key)
    input_ids = jax.random.randint(k_ids, (B, S), 0, 64, dtype=jnp.int32)
    # second sequence padded: last 3 positions masked out
    attention_mask = jnp.array(
        [[1, 1, 1, 1, 1, 1, 1, 1],
         [1, 1, 1, 1, 1, 0, 0, 0]], dtype=jnp.int32)

    feats = transformer_classifier_forward(input_ids, attention_mask, params)
    jax.block_until_ready(feats["sentence_embedding"])
    jax.block_until_ready(feats["token_embeddings"])

    assert feats["token_embeddings"].shape == (B, S, H)
    assert feats["sentence_embedding"].shape == (B, H)
    assert bool(jnp.all(jnp.isfinite(feats["token_embeddings"])))

    # sanity check of the pooling step against a pure-JAX reference
    # (tolerance loosened for the EUP approx-reciprocal in the kernel divide)
    tok = feats["token_embeddings"]
    m = attention_mask.astype(jnp.float32)[:, :, None]
    ref_sent = jnp.sum(tok * m, axis=1) / jnp.maximum(jnp.sum(m, axis=1), 1e-9)
    assert jnp.allclose(feats["sentence_embedding"], ref_sent, atol=2e-3, rtol=2e-3)

    print("KERNEL_OK")
</pallas_src>

<mosaic_0001>
module attributes {stable_mosaic.version = 11 : i64} {
  func.func @encoder_pool_kernel(%arg0: i32, %arg1: memref<2x8x32xf32, #tpu.memory_space<vmem>>, %arg2: memref<2x1x8xf32, #tpu.memory_space<vmem>>, %arg3: memref<2x8x1xf32, #tpu.memory_space<vmem>>, %arg4: memref<32x96xbf16, #tpu.memory_space<vmem>>, %arg5: memref<1x96xf32, #tpu.memory_space<vmem>>, %arg6: memref<32x32xbf16, #tpu.memory_space<vmem>>, %arg7: memref<1x32xf32, #tpu.memory_space<vmem>>, %arg8: memref<1x32xf32, #tpu.memory_space<vmem>>, %arg9: memref<1x32xf32, #tpu.memory_space<vmem>>, %arg10: memref<32x64xbf16, #tpu.memory_space<vmem>>, %arg11: memref<1x64xf32, #tpu.memory_space<vmem>>, %arg12: memref<64x32xbf16, #tpu.memory_space<vmem>>, %arg13: memref<1x32xf32, #tpu.memory_space<vmem>>, %arg14: memref<1x32xf32, #tpu.memory_space<vmem>>, %arg15: memref<1x32xf32, #tpu.memory_space<vmem>>, %arg16: memref<2x8x32xf32, #tpu.memory_space<vmem>>, %arg17: memref<2x1x32xf32, #tpu.memory_space<vmem>>) attributes {dimension_semantics = [#tpu.dimension_semantics<parallel>], iteration_bounds = array<i64: 1>, scalar_prefetch = 0 : i64, scratch_operands = 0 : i64, tpu.core_type = #tpu.core_type<tc>, window_params = [{transform_indices = @transform_0, window_bounds = array<i64: 2, 8, 32>}, {transform_indices = @transform_1, window_bounds = array<i64: 2, 1, 8>}, {transform_indices = @transform_2, window_bounds = array<i64: 2, 8, 1>}, {pipeline_mode = #tpu.pipeline_mode<synchronous>, transform_indices = @transform_3, window_bounds = array<i64: 32, 96>}, {pipeline_mode = #tpu.pipeline_mode<synchronous>, transform_indices = @transform_4, window_bounds = array<i64: 1, 96>}, {pipeline_mode = #tpu.pipeline_mode<synchronous>, transform_indices = @transform_5, window_bounds = array<i64: 32, 32>}, {pipeline_mode = #tpu.pipeline_mode<synchronous>, transform_indices = @transform_6, window_bounds = array<i64: 1, 32>}, {pipeline_mode = #tpu.pipeline_mode<synchronous>, transform_indices = @transform_7, window_bounds = array<i64: 1, 32>}, {pipeline_mode = #tpu.pipeline_mode<synchronous>, transform_indices = @transform_8, window_bounds = array<i64: 1, 32>}, {pipeline_mode = #tpu.pipeline_mode<synchronous>, transform_indices = @transform_9, window_bounds = array<i64: 32, 64>}, {pipeline_mode = #tpu.pipeline_mode<synchronous>, transform_indices = @transform_10, window_bounds = array<i64: 1, 64>}, {pipeline_mode = #tpu.pipeline_mode<synchronous>, transform_indices = @transform_11, window_bounds = array<i64: 64, 32>}, {pipeline_mode = #tpu.pipeline_mode<synchronous>, transform_indices = @transform_12, window_bounds = array<i64: 1, 32>}, {pipeline_mode = #tpu.pipeline_mode<synchronous>, transform_indices = @transform_13, window_bounds = array<i64: 1, 32>}, {pipeline_mode = #tpu.pipeline_mode<synchronous>, transform_indices = @transform_14, window_bounds = array<i64: 1, 32>}, {transform_indices = @transform_15, window_bounds = array<i64: 2, 8, 32>}, {transform_indices = @transform_16, window_bounds = array<i64: 2, 1, 32>}]} {
    %c0 = arith.constant 0 : index
    %c0_0 = arith.constant 0 : index
    %c0_1 = arith.constant 0 : index
    %0 = vector.load %arg1[%c0, %c0_0, %c0_1] : memref<2x8x32xf32, #tpu.memory_space<vmem>>, vector<2x8x32xf32>
    %1 = vector.shape_cast %0 : vector<2x8x32xf32> to vector<16x32xf32>
    %2 = arith.truncf %1 : vector<16x32xf32> to vector<16x32xbf16>
    %c0_2 = arith.constant 0 : index
    %c0_3 = arith.constant 0 : index
    %3 = vector.load %arg4[%c0_2, %c0_3] : memref<32x96xbf16, #tpu.memory_space<vmem>>, vector<32x96xbf16>
    %cst = arith.constant dense<0.000000e+00> : vector<16x96xf32>
    %4 = tpu.matmul %2, %3, %cst {dimension_numbers = #tpu.dot_dimension_numbers<[1], [0], [0], [1], [0, 0, 1, 1], [], []>} : vector<16x32xbf16>, vector<32x96xbf16>, vector<16x96xf32> -> vector<16x96xf32>
    %c0_4 = arith.constant 0 : index
    %c0_5 = arith.constant 0 : index
    %5 = vector.load %arg5[%c0_4, %c0_5] : memref<1x96xf32, #tpu.memory_space<vmem>>, vector<1x96xf32>
    %6 = vector.broadcast %5 : vector<1x96xf32> to vector<16x96xf32>
    %7 = arith.addf %4, %6 : vector<16x96xf32>
    %8 = vector.extract_strided_slice %7 {offsets = [0, 0], sizes = [16, 32], strides = [1, 1]} : vector<16x96xf32> to vector<16x32xf32>
    %cst_6 = arith.constant 0.176776692 : f32
    %9 = vector.broadcast %cst_6 : f32 to vector<16x32xf32>
    %10 = arith.mulf %8, %9 : vector<16x32xf32>
    %11 = arith.truncf %10 : vector<16x32xf32> to vector<16x32xbf16>
    %12 = vector.shape_cast %11 : vector<16x32xbf16> to vector<2x8x32xbf16>
    %13 = vector.extract_strided_slice %7 {offsets = [0, 32], sizes = [16, 32], strides = [1, 1]} : vector<16x96xf32> to vector<16x32xf32>
    %14 = arith.truncf %13 : vector<16x32xf32> to vector<16x32xbf16>
    %15 = vector.shape_cast %14 : vector<16x32xbf16> to vector<2x8x32xbf16>
    %16 = vector.extract_strided_slice %7 {offsets = [0, 64], sizes = [16, 32], strides = [1, 1]} : vector<16x96xf32> to vector<16x32xf32>
    %17 = arith.truncf %16 : vector<16x32xf32> to vector<16x32xbf16>
    %18 = vector.shape_cast %17 : vector<16x32xbf16> to vector<2x8x32xbf16>
    "tpu.trace_start"() <{level = 10 : i32, message = "bqd,bkd->bqk"}> : () -> ()
    %cst_7 = arith.constant dense<0.000000e+00> : vector<2x8x8xf32>
    %19 = tpu.matmul %12, %15, %cst_7 {dimension_numbers = #tpu.dot_dimension_numbers<[2], [2], [1], [1], [0, 0, 0, 1, 1, 1], [0], [0]>} : vector<2x8x32xbf16>, vector<2x8x32xbf16>, vector<2x8x8xf32> -> vector<2x8x8xf32>
    "tpu.trace_stop"() : () -> ()
    %c0_8 = arith.constant 0 : index
    %c0_9 = arith.constant 0 : index
    %c0_10 = arith.constant 0 : index
    %20 = vector.load %arg2[%c0_8, %c0_9, %c0_10] : memref<2x1x8xf32, #tpu.memory_space<vmem>>, vector<2x1x8xf32>
    %21 = vector.broadcast %20 : vector<2x1x8xf32> to vector<2x8x8xf32>
    %22 = arith.addf %19, %21 : vector<2x8x8xf32>
    %cst_11 = arith.constant dense<0xFF800000> : vector<2x8xf32>
    %23 = vector.multi_reduction <maximumf>, %22, %cst_11 [2] : vector<2x8x8xf32> to vector<2x8xf32>
    %24 = vector.shape_cast %23 : vector<2x8xf32> to vector<2x8x1xf32>
    %25 = vector.broadcast %24 : vector<2x8x1xf32> to vector<2x8x8xf32>
    %26 = arith.subf %22, %25 : vector<2x8x8xf32>
    %27 = math.exp %26 : vector<2x8x8xf32>
    %cst_12 = arith.constant dense<0.000000e+00> : vector<2x8xf32>
    %28 = vector.multi_reduction <add>, %27, %cst_12 [2] : vector<2x8x8xf32> to vector<2x8xf32>
    %29 = vector.shape_cast %28 : vector<2x8xf32> to vector<2x8x1xf32>
    %30 = tpu.reciprocal %29 {approx = true} : vector<2x8x1xf32> -> vector<2x8x1xf32>
    %31 = vector.broadcast %30 : vector<2x8x1xf32> to vector<2x8x8xf32>
    %32 = arith.mulf %27, %31 : vector<2x8x8xf32>
    %33 = arith.truncf %32 : vector<2x8x8xf32> to vector<2x8x8xbf16>
    "tpu.trace_start"() <{level = 10 : i32, message = "bqk,bkh->bqh"}> : () -> ()
    %cst_13 = arith.constant dense<0.000000e+00> : vector<2x8x32xf32>
    %34 = tpu.matmul %33, %18, %cst_13 {dimension_numbers = #tpu.dot_dimension_numbers<[2], [1], [1], [2], [0, 0, 0, 1, 1, 2], [0], [0]>} : vector<2x8x8xbf16>, vector<2x8x32xbf16>, vector<2x8x32xf32> -> vector<2x8x32xf32>
    "tpu.trace_stop"() : () -> ()
    %35 = vector.shape_cast %34 : vector<2x8x32xf32> to vector<16x32xf32>
    %36 = arith.truncf %35 : vector<16x32xf32> to vector<16x32xbf16>
    %c0_14 = arith.constant 0 : index
    %c0_15 = arith.constant 0 : index
    %37 = vector.load %arg6[%c0_14, %c0_15] : memref<32x32xbf16, #tpu.memory_space<vmem>>, vector<32x32xbf16>
    %cst_16 = arith.constant dense<0.000000e+00> : vector<16x32xf32>
    %38 = tpu.matmul %36, %37, %cst_16 {dimension_numbers = #tpu.dot_dimension_numbers<[1], [0], [0], [1], [0, 0, 1, 1], [], []>} : vector<16x32xbf16>, vector<32x32xbf16>, vector<16x32xf32> -> vector<16x32xf32>
    %c0_17 = arith.constant 0 : index
    %c0_18 = arith.constant 0 : index
    %39 = vector.load %arg7[%c0_17, %c0_18] : memref<1x32xf32, #tpu.memory_space<vmem>>, vector<1x32xf32>
    %40 = vector.broadcast %39 : vector<1x32xf32> to vector<16x32xf32>
    %41 = arith.addf %38, %40 : vector<16x32xf32>
    %42 = arith.addf %1, %41 : vector<16x32xf32>
    %c0_19 = arith.constant 0 : index
    %c0_20 = arith.constant 0 : index
    %43 = vector.load %arg8[%c0_19, %c0_20] : memref<1x32xf32, #tpu.memory_space<vmem>>, vector<1x32xf32>
    %c0_21 = arith.constant 0 : index
    %c0_22 = arith.constant 0 : index
    %44 = vector.load %arg9[%c0_21, %c0_22] : memref<1x32xf32, #tpu.memory_space<vmem>>, vector<1x32xf32>
    %cst_23 = arith.constant dense<0.000000e+00> : vector<16xf32>
    %45 = vector.multi_reduction <add>, %42, %cst_23 [1] : vector<16x32xf32> to vector<16xf32>
    %46 = vector.shape_cast %45 : vector<16xf32> to vector<16x1xf32>
    %cst_24 = arith.constant 3.200000e+01 : f32
    %47 = vector.broadcast %cst_24 : f32 to vector<16x1xf32>
    %48 = arith.divf %46, %47 : vector<16x1xf32>
    %49 = vector.broadcast %48 : vector<16x1xf32> to vector<16x32xf32>
    %50 = arith.subf %42, %49 : vector<16x32xf32>
    %51 = arith.mulf %50, %50 : vector<16x32xf32>
    %cst_25 = arith.constant dense<0.000000e+00> : vector<16xf32>
    %52 = vector.multi_reduction <add>, %51, %cst_25 [1] : vector<16x32xf32> to vector<16xf32>
    %53 = vector.shape_cast %52 : vector<16xf32> to vector<16x1xf32>
    %cst_26 = arith.constant 3.200000e+01 : f32
    %54 = vector.broadcast %cst_26 : f32 to vector<16x1xf32>
    %55 = arith.divf %53, %54 : vector<16x1xf32>
    %cst_27 = arith.constant 9.99999996E-13 : f32
    %56 = vector.broadcast %cst_27 : f32 to vector<16x1xf32>
    %57 = arith.addf %55, %56 : vector<16x1xf32>
    %58 = math.rsqrt %57 : vector<16x1xf32>
    %59 = vector.broadcast %58 : vector<16x1xf32> to vector<16x32xf32>
    %60 = arith.mulf %50, %59 : vector<16x32xf32>
    %61 = vector.broadcast %43 : vector<1x32xf32> to vector<16x32xf32>
    %62 = arith.mulf %60, %61 : vector<16x32xf32>
    %63 = vector.broadcast %44 : vector<1x32xf32> to vector<16x32xf32>
    %64 = arith.addf %62, %63 : vector<16x32xf32>
    %65 = arith.truncf %64 : vector<16x32xf32> to vector<16x32xbf16>
    %c0_28 = arith.constant 0 : index
    %c0_29 = arith.constant 0 : index
    %66 = vector.load %arg10[%c0_28, %c0_29] : memref<32x64xbf16, #tpu.memory_space<vmem>>, vector<32x64xbf16>
    %cst_30 = arith.constant dense<0.000000e+00> : vector<16x64xf32>
    %67 = tpu.matmul %65, %66, %cst_30 {dimension_numbers = #tpu.dot_dimension_numbers<[1], [0], [0], [1], [0, 0, 1, 1], [], []>} : vector<16x32xbf16>, vector<32x64xbf16>, vector<16x64xf32> -> vector<16x64xf32>
    %c0_31 = arith.constant 0 : index
    %c0_32 = arith.constant 0 : index
    %68 = vector.load %arg11[%c0_31, %c0_32] : memref<1x64xf32, #tpu.memory_space<vmem>>, vector<1x64xf32>
    %69 = vector.broadcast %68 : vector<1x64xf32> to vector<16x64xf32>
    %70 = arith.addf %67, %69 : vector<16x64xf32>
    %71 = arith.mulf %70, %70 : vector<16x64xf32>
    %72 = arith.mulf %70, %71 : vector<16x64xf32>
    %cst_33 = arith.constant 4.471500e-02 : f32
    %73 = vector.broadcast %cst_33 : f32 to vector<16x64xf32>
    %74 = arith.mulf %73, %72 : vector<16x64xf32>
    %75 = arith.addf %70, %74 : vector<16x64xf32>
    %cst_34 = arith.constant 0.797884583 : f32
    %76 = vector.broadcast %cst_34 : f32 to vector<16x64xf32>
    %77 = arith.mulf %76, %75 : vector<16x64xf32>
    %78 = math.tanh %77 : vector<16x64xf32>
    %cst_35 = arith.constant 1.000000e+00 : f32
    %79 = vector.broadcast %cst_35 : f32 to vector<16x64xf32>
    %80 = arith.addf %79, %78 : vector<16x64xf32>
    %cst_36 = arith.constant 5.000000e-01 : f32
    %81 = vector.broadcast %cst_36 : f32 to vector<16x64xf32>
    %82 = arith.mulf %81, %80 : vector<16x64xf32>
    %83 = arith.mulf %70, %82 : vector<16x64xf32>
    %84 = arith.truncf %83 : vector<16x64xf32> to vector<16x64xbf16>
    %c0_37 = arith.constant 0 : index
    %c0_38 = arith.constant 0 : index
    %85 = vector.load %arg12[%c0_37, %c0_38] : memref<64x32xbf16, #tpu.memory_space<vmem>>, vector<64x32xbf16>
    %cst_39 = arith.constant dense<0.000000e+00> : vector<16x32xf32>
    %86 = tpu.matmul %84, %85, %cst_39 {dimension_numbers = #tpu.dot_dimension_numbers<[1], [0], [0], [1], [0, 0, 1, 1], [], []>} : vector<16x64xbf16>, vector<64x32xbf16>, vector<16x32xf32> -> vector<16x32xf32>
    %c0_40 = arith.constant 0 : index
    %c0_41 = arith.constant 0 : index
    %87 = vector.load %arg13[%c0_40, %c0_41] : memref<1x32xf32, #tpu.memory_space<vmem>>, vector<1x32xf32>
    %88 = vector.broadcast %87 : vector<1x32xf32> to vector<16x32xf32>
    %89 = arith.addf %86, %88 : vector<16x32xf32>
    %90 = arith.addf %64, %89 : vector<16x32xf32>
    %c0_42 = arith.constant 0 : index
    %c0_43 = arith.constant 0 : index
    %91 = vector.load %arg14[%c0_42, %c0_43] : memref<1x32xf32, #tpu.memory_space<vmem>>, vector<1x32xf32>
    %c0_44 = arith.constant 0 : index
    %c0_45 = arith.constant 0 : index
    %92 = vector.load %arg15[%c0_44, %c0_45] : memref<1x32xf32, #tpu.memory_space<vmem>>, vector<1x32xf32>
    %cst_46 = arith.constant dense<0.000000e+00> : vector<16xf32>
    %93 = vector.multi_reduction <add>, %90, %cst_46 [1] : vector<16x32xf32> to vector<16xf32>
    %94 = vector.shape_cast %93 : vector<16xf32> to vector<16x1xf32>
    %cst_47 = arith.constant 3.200000e+01 : f32
    %95 = vector.broadcast %cst_47 : f32 to vector<16x1xf32>
    %96 = arith.divf %94, %95 : vector<16x1xf32>
    %97 = vector.broadcast %96 : vector<16x1xf32> to vector<16x32xf32>
    %98 = arith.subf %90, %97 : vector<16x32xf32>
    %99 = arith.mulf %98, %98 : vector<16x32xf32>
    %cst_48 = arith.constant dense<0.000000e+00> : vector<16xf32>
    %100 = vector.multi_reduction <add>, %99, %cst_48 [1] : vector<16x32xf32> to vector<16xf32>
    %101 = vector.shape_cast %100 : vector<16xf32> to vector<16x1xf32>
    %cst_49 = arith.constant 3.200000e+01 : f32
    %102 = vector.broadcast %cst_49 : f32 to vector<16x1xf32>
    %103 = arith.divf %101, %102 : vector<16x1xf32>
    %cst_50 = arith.constant 9.99999996E-13 : f32
    %104 = vector.broadcast %cst_50 : f32 to vector<16x1xf32>
    %105 = arith.addf %103, %104 : vector<16x1xf32>
    %106 = math.rsqrt %105 : vector<16x1xf32>
    %107 = vector.broadcast %106 : vector<16x1xf32> to vector<16x32xf32>
    %108 = arith.mulf %98, %107 : vector<16x32xf32>
    %109 = vector.broadcast %91 : vector<1x32xf32> to vector<16x32xf32>
    %110 = arith.mulf %108, %109 : vector<16x32xf32>
    %111 = vector.broadcast %92 : vector<1x32xf32> to vector<16x32xf32>
    %112 = arith.addf %110, %111 : vector<16x32xf32>
    %113 = vector.shape_cast %112 : vector<16x32xf32> to vector<2x8x32xf32>
    %c0_51 = arith.constant 0 : index
    %c0_52 = arith.constant 0 : index
    %c0_53 = arith.constant 0 : index
    %114 = vector.load %arg16[%c0_51, %c0_52, %c0_53] : memref<2x8x32xf32, #tpu.memory_space<vmem>>, vector<2x8x32xf32>
    tpu.vector_store %arg16[%c0_51, %c0_52, %c0_53], %113 {strides = array<i32>} : memref<2x8x32xf32, #tpu.memory_space<vmem>>, vector<2x8x32xf32>,
    %c0_54 = arith.constant 0 : index
    %c0_55 = arith.constant 0 : index
    %c0_56 = arith.constant 0 : index
    %115 = vector.load %arg3[%c0_54, %c0_55, %c0_56] : memref<2x8x1xf32, #tpu.memory_space<vmem>>, vector<2x8x1xf32>
    %116 = vector.broadcast %115 : vector<2x8x1xf32> to vector<2x8x32xf32>
    %117 = arith.mulf %113, %116 : vector<2x8x32xf32>
    %cst_57 = arith.constant dense<0.000000e+00> : vector<2x32xf32>
    %118 = vector.multi_reduction <add>, %117, %cst_57 [1] : vector<2x8x32xf32> to vector<2x32xf32>
    %119 = vector.shape_cast %118 : vector<2x32xf32> to vector<2x1x32xf32>
    %cst_58 = arith.constant dense<0.000000e+00> : vector<2x1xf32>
    %120 = vector.multi_reduction <add>, %115, %cst_58 [1] : vector<2x8x1xf32> to vector<2x1xf32>
    %121 = vector.shape_cast %120 : vector<2x1xf32> to vector<2x1x1xf32>
    %cst_59 = arith.constant 9.99999971E-10 : f32
    %122 = vector.broadcast %cst_59 : f32 to vector<2x1x1xf32>
    %123 = arith.maximumf %121, %122 : vector<2x1x1xf32>
    %124 = tpu.reciprocal %123 {approx = true} : vector<2x1x1xf32> -> vector<2x1x1xf32>
    %125 = vector.broadcast %124 : vector<2x1x1xf32> to vector<2x1x32xf32>
    %126 = arith.mulf %119, %125 : vector<2x1x32xf32>
    %c0_60 = arith.constant 0 : index
    %c0_61 = arith.constant 0 : index
    %c0_62 = arith.constant 0 : index
    %127 = vector.load %arg17[%c0_60, %c0_61, %c0_62] : memref<2x1x32xf32, #tpu.memory_space<vmem>>, vector<2x1x32xf32>
    tpu.vector_store %arg17[%c0_60, %c0_61, %c0_62], %126 {strides = array<i32>} : memref<2x1x32xf32, #tpu.memory_space<vmem>>, vector<2x1x32xf32>,
    return
  }
  func.func @transform_0(%arg0: i32) -> (i32, i32, i32) {
    %c0_i32 = arith.constant 0 : i32
    %c0_i32_0 = arith.constant 0 : i32
    %c0_i32_1 = arith.constant 0 : i32
    return %arg0, %c0_i32, %c0_i32_0 : i32, i32, i32
  }
  func.func @transform_1(%arg0: i32) -> (i32, i32, i32) {
    %c0_i32 = arith.constant 0 : i32
    %c0_i32_0 = arith.constant 0 : i32
    %c0_i32_1 = arith.constant 0 : i32
    return %arg0, %c0_i32, %c0_i32_0 : i32, i32, i32
  }
  func.func @transform_2(%arg0: i32) -> (i32, i32, i32) {
    %c0_i32 = arith.constant 0 : i32
    %c0_i32_0 = arith.constant 0 : i32
    %c0_i32_1 = arith.constant 0 : i32
    return %arg0, %c0_i32, %c0_i32_0 : i32, i32, i32
  }
  func.func @transform_3(%arg0: i32) -> (i32, i32) {
    %c0_i32 = arith.constant 0 : i32
    %c0_i32_0 = arith.constant 0 : i32
    %c0_i32_1 = arith.constant 0 : i32
    return %c0_i32, %c0_i32_0 : i32, i32
  }
  func.func @transform_4(%arg0: i32) -> (i32, i32) {
    %c0_i32 = arith.constant 0 : i32
    %c0_i32_0 = arith.constant 0 : i32
    %c0_i32_1 = arith.constant 0 : i32
    return %c0_i32, %c0_i32_0 : i32, i32
  }
  func.func @transform_5(%arg0: i32) -> (i32, i32) {
    %c0_i32 = arith.constant 0 : i32
    %c0_i32_0 = arith.constant 0 : i32
    %c0_i32_1 = arith.constant 0 : i32
    return %c0_i32, %c0_i32_0 : i32, i32
  }
  func.func @transform_6(%arg0: i32) -> (i32, i32) {
    %c0_i32 = arith.constant 0 : i32
    %c0_i32_0 = arith.constant 0 : i32
    %c0_i32_1 = arith.constant 0 : i32
    return %c0_i32, %c0_i32_0 : i32, i32
  }
  func.func @transform_7(%arg0: i32) -> (i32, i32) {
    %c0_i32 = arith.constant 0 : i32
    %c0_i32_0 = arith.constant 0 : i32
    %c0_i32_1 = arith.constant 0 : i32
    return %c0_i32, %c0_i32_0 : i32, i32
  }
  func.func @transform_8(%arg0: i32) -> (i32, i32) {
    %c0_i32 = arith.constant 0 : i32
    %c0_i32_0 = arith.constant 0 : i32
    %c0_i32_1 = arith.constant 0 : i32
    return %c0_i32, %c0_i32_0 : i32, i32
  }
  func.func @transform_9(%arg0: i32) -> (i32, i32) {
    %c0_i32 = arith.constant 0 : i32
    %c0_i32_0 = arith.constant 0 : i32
    %c0_i32_1 = arith.constant 0 : i32
    return %c0_i32, %c0_i32_0 : i32, i32
  }
  func.func @transform_10(%arg0: i32) -> (i32, i32) {
    %c0_i32 = arith.constant 0 : i32
    %c0_i32_0 = arith.constant 0 : i32
    %c0_i32_1 = arith.constant 0 : i32
    return %c0_i32, %c0_i32_0 : i32, i32
  }
  func.func @transform_11(%arg0: i32) -> (i32, i32) {
    %c0_i32 = arith.constant 0 : i32
    %c0_i32_0 = arith.constant 0 : i32
    %c0_i32_1 = arith.constant 0 : i32
    return %c0_i32, %c0_i32_0 : i32, i32
  }
  func.func @transform_12(%arg0: i32) -> (i32, i32) {
    %c0_i32 = arith.constant 0 : i32
    %c0_i32_0 = arith.constant 0 : i32
    %c0_i32_1 = arith.constant 0 : i32
    return %c0_i32, %c0_i32_0 : i32, i32
  }
  func.func @transform_13(%arg0: i32) -> (i32, i32) {
    %c0_i32 = arith.constant 0 : i32
    %c0_i32_0 = arith.constant 0 : i32
    %c0_i32_1 = arith.constant 0 : i32
    return %c0_i32, %c0_i32_0 : i32, i32
  }
  func.func @transform_14(%arg0: i32) -> (i32, i32) {
    %c0_i32 = arith.constant 0 : i32
    %c0_i32_0 = arith.constant 0 : i32
    %c0_i32_1 = arith.constant 0 : i32
    return %c0_i32, %c0_i32_0 : i32, i32
  }
  func.func @transform_15(%arg0: i32) -> (i32, i32, i32) {
    %c0_i32 = arith.constant 0 : i32
    %c0_i32_0 = arith.constant 0 : i32
    %c0_i32_1 = arith.constant 0 : i32
    return %arg0, %c0_i32, %c0_i32_0 : i32, i32, i32
  }
  func.func @transform_16(%arg0: i32) -> (i32, i32, i32) {
    %c0_i32 = arith.constant 0 : i32
    %c0_i32_0 = arith.constant 0 : i32
    %c0_i32_1 = arith.constant 0 : i32
    return %arg0, %c0_i32, %c0_i32_0 : i32, i32, i32
  }
}

module attributes {stable_mosaic.version = 11 : i64} {
  func.func @encoder_pool_kernel(%arg0: i32, %arg1: memref<2x8x32xf32, #tpu.memory_space<vmem>>, %arg2: memref<2x1x8xf32, #tpu.memory_space<vmem>>, %arg3: memref<2x8x1xf32, #tpu.memory_space<vmem>>, %arg4: memref<32x96xbf16, #tpu.memory_space<vmem>>, %arg5: memref<1x96xf32, #tpu.memory_space<vmem>>, %arg6: memref<32x32xbf16, #tpu.memory_space<vmem>>, %arg7: memref<1x32xf32, #tpu.memory_space<vmem>>, %arg8: memref<1x32xf32, #tpu.memory_space<vmem>>, %arg9: memref<1x32xf32, #tpu.memory_space<vmem>>, %arg10: memref<32x64xbf16, #tpu.memory_space<vmem>>, %arg11: memref<1x64xf32, #tpu.memory_space<vmem>>, %arg12: memref<64x32xbf16, #tpu.memory_space<vmem>>, %arg13: memref<1x32xf32, #tpu.memory_space<vmem>>, %arg14: memref<1x32xf32, #tpu.memory_space<vmem>>, %arg15: memref<1x32xf32, #tpu.memory_space<vmem>>, %arg16: memref<2x8x32xf32, #tpu.memory_space<vmem>>, %arg17: memref<2x1x32xf32, #tpu.memory_space<vmem>>) attributes {dimension_semantics = [#tpu.dimension_semantics<parallel>], iteration_bounds = array<i64: 1>, scalar_prefetch = 0 : i64, scratch_operands = 0 : i64, tpu.core_type = #tpu.core_type<tc>, window_params = [{transform_indices = @transform_0, window_bounds = array<i64: 2, 8, 32>}, {transform_indices = @transform_1, window_bounds = array<i64: 2, 1, 8>}, {transform_indices = @transform_2, window_bounds = array<i64: 2, 8, 1>}, {pipeline_mode = #tpu.pipeline_mode<synchronous>, transform_indices = @transform_3, window_bounds = array<i64: 32, 96>}, {pipeline_mode = #tpu.pipeline_mode<synchronous>, transform_indices = @transform_4, window_bounds = array<i64: 1, 96>}, {pipeline_mode = #tpu.pipeline_mode<synchronous>, transform_indices = @transform_5, window_bounds = array<i64: 32, 32>}, {pipeline_mode = #tpu.pipeline_mode<synchronous>, transform_indices = @transform_6, window_bounds = array<i64: 1, 32>}, {pipeline_mode = #tpu.pipeline_mode<synchronous>, transform_indices = @transform_7, window_bounds = array<i64: 1, 32>}, {pipeline_mode = #tpu.pipeline_mode<synchronous>, transform_indices = @transform_8, window_bounds = array<i64: 1, 32>}, {pipeline_mode = #tpu.pipeline_mode<synchronous>, transform_indices = @transform_9, window_bounds = array<i64: 32, 64>}, {pipeline_mode = #tpu.pipeline_mode<synchronous>, transform_indices = @transform_10, window_bounds = array<i64: 1, 64>}, {pipeline_mode = #tpu.pipeline_mode<synchronous>, transform_indices = @transform_11, window_bounds = array<i64: 64, 32>}, {pipeline_mode = #tpu.pipeline_mode<synchronous>, transform_indices = @transform_12, window_bounds = array<i64: 1, 32>}, {pipeline_mode = #tpu.pipeline_mode<synchronous>, transform_indices = @transform_13, window_bounds = array<i64: 1, 32>}, {pipeline_mode = #tpu.pipeline_mode<synchronous>, transform_indices = @transform_14, window_bounds = array<i64: 1, 32>}, {transform_indices = @transform_15, window_bounds = array<i64: 2, 8, 32>}, {transform_indices = @transform_16, window_bounds = array<i64: 2, 1, 32>}]} {
    %c0 = arith.constant 0 : index
    %c0_0 = arith.constant 0 : index
    %c0_1 = arith.constant 0 : index
    %0 = vector.load %arg1[%c0, %c0_0, %c0_1] : memref<2x8x32xf32, #tpu.memory_space<vmem>>, vector<2x8x32xf32>
    %1 = vector.shape_cast %0 : vector<2x8x32xf32> to vector<16x32xf32>
    %2 = arith.truncf %1 : vector<16x32xf32> to vector<16x32xbf16>
    %c0_2 = arith.constant 0 : index
    %c0_3 = arith.constant 0 : index
    %3 = vector.load %arg4[%c0_2, %c0_3] : memref<32x96xbf16, #tpu.memory_space<vmem>>, vector<32x96xbf16>
    %cst = arith.constant dense<0.000000e+00> : vector<16x96xf32>
    %4 = tpu.matmul %2, %3, %cst {dimension_numbers = #tpu.dot_dimension_numbers<[1], [0], [0], [1], [0, 0, 1, 1], [], []>} : vector<16x32xbf16>, vector<32x96xbf16>, vector<16x96xf32> -> vector<16x96xf32>
    %c0_4 = arith.constant 0 : index
    %c0_5 = arith.constant 0 : index
    %5 = vector.load %arg5[%c0_4, %c0_5] : memref<1x96xf32, #tpu.memory_space<vmem>>, vector<1x96xf32>
    %6 = vector.broadcast %5 : vector<1x96xf32> to vector<16x96xf32>
    %7 = arith.addf %4, %6 : vector<16x96xf32>
    %8 = vector.extract_strided_slice %7 {offsets = [0, 0], sizes = [16, 32], strides = [1, 1]} : vector<16x96xf32> to vector<16x32xf32>
    %cst_6 = arith.constant 0.176776692 : f32
    %9 = vector.broadcast %cst_6 : f32 to vector<16x32xf32>
    %10 = arith.mulf %8, %9 : vector<16x32xf32>
    %11 = arith.truncf %10 : vector<16x32xf32> to vector<16x32xbf16>
    %12 = vector.shape_cast %11 : vector<16x32xbf16> to vector<2x8x32xbf16>
    %13 = vector.extract_strided_slice %7 {offsets = [0, 32], sizes = [16, 32], strides = [1, 1]} : vector<16x96xf32> to vector<16x32xf32>
    %14 = arith.truncf %13 : vector<16x32xf32> to vector<16x32xbf16>
    %15 = vector.shape_cast %14 : vector<16x32xbf16> to vector<2x8x32xbf16>
    %16 = vector.extract_strided_slice %7 {offsets = [0, 64], sizes = [16, 32], strides = [1, 1]} : vector<16x96xf32> to vector<16x32xf32>
    %17 = arith.truncf %16 : vector<16x32xf32> to vector<16x32xbf16>
    %18 = vector.shape_cast %17 : vector<16x32xbf16> to vector<2x8x32xbf16>
    "tpu.trace_start"() <{level = 10 : i32, message = "bqd,bkd->bqk"}> : () -> ()
    %cst_7 = arith.constant dense<0.000000e+00> : vector<2x8x8xf32>
    %19 = tpu.matmul %12, %15, %cst_7 {dimension_numbers = #tpu.dot_dimension_numbers<[2], [2], [1], [1], [0, 0, 0, 1, 1, 1], [0], [0]>} : vector<2x8x32xbf16>, vector<2x8x32xbf16>, vector<2x8x8xf32> -> vector<2x8x8xf32>
    "tpu.trace_stop"() : () -> ()
    %c0_8 = arith.constant 0 : index
    %c0_9 = arith.constant 0 : index
    %c0_10 = arith.constant 0 : index
    %20 = vector.load %arg2[%c0_8, %c0_9, %c0_10] : memref<2x1x8xf32, #tpu.memory_space<vmem>>, vector<2x1x8xf32>
    %21 = vector.broadcast %20 : vector<2x1x8xf32> to vector<2x8x8xf32>
    %22 = arith.addf %19, %21 : vector<2x8x8xf32>
    %cst_11 = arith.constant dense<0xFF800000> : vector<2x8xf32>
    %23 = vector.multi_reduction <maximumf>, %22, %cst_11 [2] : vector<2x8x8xf32> to vector<2x8xf32>
    %24 = vector.shape_cast %23 : vector<2x8xf32> to vector<2x8x1xf32>
    %25 = vector.broadcast %24 : vector<2x8x1xf32> to vector<2x8x8xf32>
    %26 = arith.subf %22, %25 : vector<2x8x8xf32>
    %27 = math.exp %26 : vector<2x8x8xf32>
    %cst_12 = arith.constant dense<0.000000e+00> : vector<2x8xf32>
    %28 = vector.multi_reduction <add>, %27, %cst_12 [2] : vector<2x8x8xf32> to vector<2x8xf32>
    %29 = vector.shape_cast %28 : vector<2x8xf32> to vector<2x8x1xf32>
    %30 = tpu.reciprocal %29 {approx = true} : vector<2x8x1xf32> -> vector<2x8x1xf32>
    %31 = vector.broadcast %30 : vector<2x8x1xf32> to vector<2x8x8xf32>
    %32 = arith.mulf %27, %31 : vector<2x8x8xf32>
    %33 = arith.truncf %32 : vector<2x8x8xf32> to vector<2x8x8xbf16>
    "tpu.trace_start"() <{level = 10 : i32, message = "bqk,bkh->bqh"}> : () -> ()
    %cst_13 = arith.constant dense<0.000000e+00> : vector<2x8x32xf32>
    %34 = tpu.matmul %33, %18, %cst_13 {dimension_numbers = #tpu.dot_dimension_numbers<[2], [1], [1], [2], [0, 0, 0, 1, 1, 2], [0], [0]>} : vector<2x8x8xbf16>, vector<2x8x32xbf16>, vector<2x8x32xf32> -> vector<2x8x32xf32>
    "tpu.trace_stop"() : () -> ()
    %35 = vector.shape_cast %34 : vector<2x8x32xf32> to vector<16x32xf32>
    %36 = arith.truncf %35 : vector<16x32xf32> to vector<16x32xbf16>
    %c0_14 = arith.constant 0 : index
    %c0_15 = arith.constant 0 : index
    %37 = vector.load %arg6[%c0_14, %c0_15] : memref<32x32xbf16, #tpu.memory_space<vmem>>, vector<32x32xbf16>
    %cst_16 = arith.constant dense<0.000000e+00> : vector<16x32xf32>
    %38 = tpu.matmul %36, %37, %cst_16 {dimension_numbers = #tpu.dot_dimension_numbers<[1], [0], [0], [1], [0, 0, 1, 1], [], []>} : vector<16x32xbf16>, vector<32x32xbf16>, vector<16x32xf32> -> vector<16x32xf32>
    %c0_17 = arith.constant 0 : index
    %c0_18 = arith.constant 0 : index
    %39 = vector.load %arg7[%c0_17, %c0_18] : memref<1x32xf32, #tpu.memory_space<vmem>>, vector<1x32xf32>
    %40 = vector.broadcast %39 : vector<1x32xf32> to vector<16x32xf32>
    %41 = arith.addf %38, %40 : vector<16x32xf32>
    %42 = arith.addf %1, %41 : vector<16x32xf32>
    %c0_19 = arith.constant 0 : index
    %c0_20 = arith.constant 0 : index
    %43 = vector.load %arg8[%c0_19, %c0_20] : memref<1x32xf32, #tpu.memory_space<vmem>>, vector<1x32xf32>
    %c0_21 = arith.constant 0 : index
    %c0_22 = arith.constant 0 : index
    %44 = vector.load %arg9[%c0_21, %c0_22] : memref<1x32xf32, #tpu.memory_space<vmem>>, vector<1x32xf32>
    %cst_23 = arith.constant dense<0.000000e+00> : vector<16xf32>
    %45 = vector.multi_reduction <add>, %42, %cst_23 [1] : vector<16x32xf32> to vector<16xf32>
    %46 = vector.shape_cast %45 : vector<16xf32> to vector<16x1xf32>
    %cst_24 = arith.constant 3.200000e+01 : f32
    %47 = vector.broadcast %cst_24 : f32 to vector<16x1xf32>
    %48 = arith.divf %46, %47 : vector<16x1xf32>
    %49 = vector.broadcast %48 : vector<16x1xf32> to vector<16x32xf32>
    %50 = arith.subf %42, %49 : vector<16x32xf32>
    %51 = arith.mulf %50, %50 : vector<16x32xf32>
    %cst_25 = arith.constant dense<0.000000e+00> : vector<16xf32>
    %52 = vector.multi_reduction <add>, %51, %cst_25 [1] : vector<16x32xf32> to vector<16xf32>
    %53 = vector.shape_cast %52 : vector<16xf32> to vector<16x1xf32>
    %cst_26 = arith.constant 3.200000e+01 : f32
    %54 = vector.broadcast %cst_26 : f32 to vector<16x1xf32>
    %55 = arith.divf %53, %54 : vector<16x1xf32>
    %cst_27 = arith.constant 9.99999996E-13 : f32
    %56 = vector.broadcast %cst_27 : f32 to vector<16x1xf32>
    %57 = arith.addf %55, %56 : vector<16x1xf32>
    %58 = math.rsqrt %57 : vector<16x1xf32>
    %59 = vector.broadcast %58 : vector<16x1xf32> to vector<16x32xf32>
    %60 = arith.mulf %50, %59 : vector<16x32xf32>
    %61 = vector.broadcast %43 : vector<1x32xf32> to vector<16x32xf32>
    %62 = arith.mulf %60, %61 : vector<16x32xf32>
    %63 = vector.broadcast %44 : vector<1x32xf32> to vector<16x32xf32>
    %64 = arith.addf %62, %63 : vector<16x32xf32>
    %65 = arith.truncf %64 : vector<16x32xf32> to vector<16x32xbf16>
    %c0_28 = arith.constant 0 : index
    %c0_29 = arith.constant 0 : index
    %66 = vector.load %arg10[%c0_28, %c0_29] : memref<32x64xbf16, #tpu.memory_space<vmem>>, vector<32x64xbf16>
    %cst_30 = arith.constant dense<0.000000e+00> : vector<16x64xf32>
    %67 = tpu.matmul %65, %66, %cst_30 {dimension_numbers = #tpu.dot_dimension_numbers<[1], [0], [0], [1], [0, 0, 1, 1], [], []>} : vector<16x32xbf16>, vector<32x64xbf16>, vector<16x64xf32> -> vector<16x64xf32>
    %c0_31 = arith.constant 0 : index
    %c0_32 = arith.constant 0 : index
    %68 = vector.load %arg11[%c0_31, %c0_32] : memref<1x64xf32, #tpu.memory_space<vmem>>, vector<1x64xf32>
    %69 = vector.broadcast %68 : vector<1x64xf32> to vector<16x64xf32>
    %70 = arith.addf %67, %69 : vector<16x64xf32>
    %71 = arith.mulf %70, %70 : vector<16x64xf32>
    %72 = arith.mulf %70, %71 : vector<16x64xf32>
    %cst_33 = arith.constant 4.471500e-02 : f32
    %73 = vector.broadcast %cst_33 : f32 to vector<16x64xf32>
    %74 = arith.mulf %73, %72 : vector<16x64xf32>
    %75 = arith.addf %70, %74 : vector<16x64xf32>
    %cst_34 = arith.constant 0.797884583 : f32
    %76 = vector.broadcast %cst_34 : f32 to vector<16x64xf32>
    %77 = arith.mulf %76, %75 : vector<16x64xf32>
    %78 = math.tanh %77 : vector<16x64xf32>
    %cst_35 = arith.constant 1.000000e+00 : f32
    %79 = vector.broadcast %cst_35 : f32 to vector<16x64xf32>
    %80 = arith.addf %79, %78 : vector<16x64xf32>
    %cst_36 = arith.constant 5.000000e-01 : f32
    %81 = vector.broadcast %cst_36 : f32 to vector<16x64xf32>
    %82 = arith.mulf %81, %80 : vector<16x64xf32>
    %83 = arith.mulf %70, %82 : vector<16x64xf32>
    %84 = arith.truncf %83 : vector<16x64xf32> to vector<16x64xbf16>
    %c0_37 = arith.constant 0 : index
    %c0_38 = arith.constant 0 : index
    %85 = vector.load %arg12[%c0_37, %c0_38] : memref<64x32xbf16, #tpu.memory_space<vmem>>, vector<64x32xbf16>
    %cst_39 = arith.constant dense<0.000000e+00> : vector<16x32xf32>
    %86 = tpu.matmul %84, %85, %cst_39 {dimension_numbers = #tpu.dot_dimension_numbers<[1], [0], [0], [1], [0, 0, 1, 1], [], []>} : vector<16x64xbf16>, vector<64x32xbf16>, vector<16x32xf32> -> vector<16x32xf32>
    %c0_40 = arith.constant 0 : index
    %c0_41 = arith.constant 0 : index
    %87 = vector.load %arg13[%c0_40, %c0_41] : memref<1x32xf32, #tpu.memory_space<vmem>>, vector<1x32xf32>
    %88 = vector.broadcast %87 : vector<1x32xf32> to vector<16x32xf32>
    %89 = arith.addf %86, %88 : vector<16x32xf32>
    %90 = arith.addf %64, %89 : vector<16x32xf32>
    %c0_42 = arith.constant 0 : index
    %c0_43 = arith.constant 0 : index
    %91 = vector.load %arg14[%c0_42, %c0_43] : memref<1x32xf32, #tpu.memory_space<vmem>>, vector<1x32xf32>
    %c0_44 = arith.constant 0 : index
    %c0_45 = arith.constant 0 : index
    %92 = vector.load %arg15[%c0_44, %c0_45] : memref<1x32xf32, #tpu.memory_space<vmem>>, vector<1x32xf32>
    %cst_46 = arith.constant dense<0.000000e+00> : vector<16xf32>
    %93 = vector.multi_reduction <add>, %90, %cst_46 [1] : vector<16x32xf32> to vector<16xf32>
    %94 = vector.shape_cast %93 : vector<16xf32> to vector<16x1xf32>
    %cst_47 = arith.constant 3.200000e+01 : f32
    %95 = vector.broadcast %cst_47 : f32 to vector<16x1xf32>
    %96 = arith.divf %94, %95 : vector<16x1xf32>
    %97 = vector.broadcast %96 : vector<16x1xf32> to vector<16x32xf32>
    %98 = arith.subf %90, %97 : vector<16x32xf32>
    %99 = arith.mulf %98, %98 : vector<16x32xf32>
    %cst_48 = arith.constant dense<0.000000e+00> : vector<16xf32>
    %100 = vector.multi_reduction <add>, %99, %cst_48 [1] : vector<16x32xf32> to vector<16xf32>
    %101 = vector.shape_cast %100 : vector<16xf32> to vector<16x1xf32>
    %cst_49 = arith.constant 3.200000e+01 : f32
    %102 = vector.broadcast %cst_49 : f32 to vector<16x1xf32>
    %103 = arith.divf %101, %102 : vector<16x1xf32>
    %cst_50 = arith.constant 9.99999996E-13 : f32
    %104 = vector.broadcast %cst_50 : f32 to vector<16x1xf32>
    %105 = arith.addf %103, %104 : vector<16x1xf32>
    %106 = math.rsqrt %105 : vector<16x1xf32>
    %107 = vector.broadcast %106 : vector<16x1xf32> to vector<16x32xf32>
    %108 = arith.mulf %98, %107 : vector<16x32xf32>
    %109 = vector.broadcast %91 : vector<1x32xf32> to vector<16x32xf32>
    %110 = arith.mulf %108, %109 : vector<16x32xf32>
    %111 = vector.broadcast %92 : vector<1x32xf32> to vector<16x32xf32>
    %112 = arith.addf %110, %111 : vector<16x32xf32>
    %113 = vector.shape_cast %112 : vector<16x32xf32> to vector<2x8x32xf32>
    %c0_51 = arith.constant 0 : index
    %c0_52 = arith.constant 0 : index
    %c0_53 = arith.constant 0 : index
    %114 = vector.load %arg16[%c0_51, %c0_52, %c0_53] : memref<2x8x32xf32, #tpu.memory_space<vmem>>, vector<2x8x32xf32>
    tpu.vector_store %arg16[%c0_51, %c0_52, %c0_53], %113 {strides = array<i32>} : memref<2x8x32xf32, #tpu.memory_space<vmem>>, vector<2x8x32xf32>,
    %c0_54 = arith.constant 0 : index
    %c0_55 = arith.constant 0 : index
    %c0_56 = arith.constant 0 : index
    %115 = vector.load %arg3[%c0_54, %c0_55, %c0_56] : memref<2x8x1xf32, #tpu.memory_space<vmem>>, vector<2x8x1xf32>
    %116 = vector.broadcast %115 : vector<2x8x1xf32> to vector<2x8x32xf32>
    %117 = arith.mulf %113, %116 : vector<2x8x32xf32>
    %cst_57 = arith.constant dense<0.000000e+00> : vector<2x32xf32>
    %118 = vector.multi_reduction <add>, %117, %cst_57 [1] : vector<2x8x32xf32> to vector<2x32xf32>
    %119 = vector.shape_cast %118 : vector<2x32xf32> to vector<2x1x32xf32>
    %cst_58 = arith.constant dense<0.000000e+00> : vector<2x1xf32>
    %120 = vector.multi_reduction <add>, %115, %cst_58 [1] : vector<2x8x1xf32> to vector<2x1xf32>
    %121 = vector.shape_cast %120 : vector<2x1xf32> to vector<2x1x1xf32>
    %cst_59 = arith.constant 9.99999971E-10 : f32
    %122 = vector.broadcast %cst_59 : f32 to vector<2x1x1xf32>
    %123 = arith.maximumf %121, %122 : vector<2x1x1xf32>
    %124 = tpu.reciprocal %123 {approx = true} : vector<2x1x1xf32> -> vector<2x1x1xf32>
    %125 = vector.broadcast %124 : vector<2x1x1xf32> to vector<2x1x32xf32>
    %126 = arith.mulf %119, %125 : vector<2x1x32xf32>
    %c0_60 = arith.constant 0 : index
    %c0_61 = arith.constant 0 : index
    %c0_62 = arith.constant 0 : index
    %127 = vector.load %arg17[%c0_60, %c0_61, %c0_62] : memref<2x1x32xf32, #tpu.memory_space<vmem>>, vector<2x1x32xf32>
    tpu.vector_store %arg17[%c0_60, %c0_61, %c0_62], %126 {strides = array<i32>} : memref<2x1x32xf32, #tpu.memory_space<vmem>>, vector<2x1x32xf32>,
    return
  }
  func.func @transform_0(%arg0: i32) -> (i32, i32, i32) {
    %c0_i32 = arith.constant 0 : i32
    %c0_i32_0 = arith.constant 0 : i32
    %c0_i32_1 = arith.constant 0 : i32
    return %arg0, %c0_i32, %c0_i32_0 : i32, i32, i32
  }
  func.func @transform_1(%arg0: i32) -> (i32, i32, i32) {
    %c0_i32 = arith.constant 0 : i32
    %c0_i32_0 = arith.constant 0 : i32
    %c0_i32_1 = arith.constant 0 : i32
    return %arg0, %c0_i32, %c0_i32_0 : i32, i32, i32
  }
  func.func @transform_2(%arg0: i32) -> (i32, i32, i32) {
    %c0_i32 = arith.constant 0 : i32
    %c0_i32_0 = arith.constant 0 : i32
    %c0_i32_1 = arith.constant 0 : i32
    return %arg0, %c0_i32, %c0_i32_0 : i32, i32, i32
  }
  func.func @transform_3(%arg0: i32) -> (i32, i32) {
    %c0_i32 = arith.constant 0 : i32
    %c0_i32_0 = arith.constant 0 : i32
    %c0_i32_1 = arith.constant 0 : i32
    return %c0_i32, %c0_i32_0 : i32, i32
  }
  func.func @transform_4(%arg0: i32) -> (i32, i32) {
    %c0_i32 = arith.constant 0 : i32
    %c0_i32_0 = arith.constant 0 : i32
    %c0_i32_1 = arith.constant 0 : i32
    return %c0_i32, %c0_i32_0 : i32, i32
  }
  func.func @transform_5(%arg0: i32) -> (i32, i32) {
    %c0_i32 = arith.constant 0 : i32
    %c0_i32_0 = arith.constant 0 : i32
    %c0_i32_1 = arith.constant 0 : i32
    return %c0_i32, %c0_i32_0 : i32, i32
  }
  func.func @transform_6(%arg0: i32) -> (i32, i32) {
    %c0_i32 = arith.constant 0 : i32
    %c0_i32_0 = arith.constant 0 : i32
    %c0_i32_1 = arith.constant 0 : i32
    return %c0_i32, %c0_i32_0 : i32, i32
  }
  func.func @transform_7(%arg0: i32) -> (i32, i32) {
    %c0_i32 = arith.constant 0 : i32
    %c0_i32_0 = arith.constant 0 : i32
    %c0_i32_1 = arith.constant 0 : i32
    return %c0_i32, %c0_i32_0 : i32, i32
  }
  func.func @transform_8(%arg0: i32) -> (i32, i32) {
    %c0_i32 = arith.constant 0 : i32
    %c0_i32_0 = arith.constant 0 : i32
    %c0_i32_1 = arith.constant 0 : i32
    return %c0_i32, %c0_i32_0 : i32, i32
  }
  func.func @transform_9(%arg0: i32) -> (i32, i32) {
    %c0_i32 = arith.constant 0 : i32
    %c0_i32_0 = arith.constant 0 : i32
    %c0_i32_1 = arith.constant 0 : i32
    return %c0_i32, %c0_i32_0 : i32, i32
  }
  func.func @transform_10(%arg0: i32) -> (i32, i32) {
    %c0_i32 = arith.constant 0 : i32
    %c0_i32_0 = arith.constant 0 : i32
    %c0_i32_1 = arith.constant 0 : i32
    return %c0_i32, %c0_i32_0 : i32, i32
  }
  func.func @transform_11(%arg0: i32) -> (i32, i32) {
    %c0_i32 = arith.constant 0 : i32
    %c0_i32_0 = arith.constant 0 : i32
    %c0_i32_1 = arith.constant 0 : i32
    return %c0_i32, %c0_i32_0 : i32, i32
  }
  func.func @transform_12(%arg0: i32) -> (i32, i32) {
    %c0_i32 = arith.constant 0 : i32
    %c0_i32_0 = arith.constant 0 : i32
    %c0_i32_1 = arith.constant 0 : i32
    return %c0_i32, %c0_i32_0 : i32, i32
  }
  func.func @transform_13(%arg0: i32) -> (i32, i32) {
    %c0_i32 = arith.constant 0 : i32
    %c0_i32_0 = arith.constant 0 : i32
    %c0_i32_1 = arith.constant 0 : i32
    return %c0_i32, %c0_i32_0 : i32, i32
  }
  func.func @transform_14(%arg0: i32) -> (i32, i32) {
    %c0_i32 = arith.constant 0 : i32
    %c0_i32_0 = arith.constant 0 : i32
    %c0_i32_1 = arith.constant 0 : i32
    return %c0_i32, %c0_i32_0 : i32, i32
  }
  func.func @transform_15(%arg0: i32) -> (i32, i32, i32) {
    %c0_i32 = arith.constant 0 : i32
    %c0_i32_0 = arith.constant 0 : i32
    %c0_i32_1 = arith.constant 0 : i32
    return %arg0, %c0_i32, %c0_i32_0 : i32, i32, i32
  }
  func.func @transform_16(%arg0: i32) -> (i32, i32, i32) {
    %c0_i32 = arith.constant 0 : i32
    %c0_i32_0 = arith.constant 0 : i32
    %c0_i32_1 = arith.constant 0 : i32
    return %arg0, %c0_i32, %c0_i32_0 : i32, i32, i32
  }
}

</mosaic_0001>

<bundles_post_ra>
// kernel: tpu_custom_call.1
= control target key start
LH: loop header
LB: loop body
LE: loop exit
PB: predicated region body
PF: predicated region fallthrough
CT: control target
= control target key end

     0   :  { %s1021_s0 = inlined_call_operand.vmem [shape: f32[2,8,32], index: 0, kind: input, shape index: {}]   ;;  %s1022_s1 = inlined_call_operand.vmem [shape: f32[2,1,8], index: 1, kind: input, shape index: {}]   ;;  %s1023_s2 = inlined_call_operand.vmem [shape: f32[2,8,1], index: 2, kind: input, shape index: {}]   ;;  %s1024_s3 = inlined_call_operand.vmem [shape: bf16[32,96], index: 3, kind: input, shape index: {}]   ;;  %s1025_s4 = inlined_call_operand.vmem [shape: f32[1,96], index: 4, kind: input, shape index: {}]   ;;  %s1026_s5 = inlined_call_operand.vmem [shape: bf16[32,32], index: 5, kind: input, shape index: {}]   ;;  %s1027_s6 = inlined_call_operand.vmem [shape: f32[1,32], index: 6, kind: input, shape index: {}]   ;;  %s1028_s7 = inlined_call_operand.vmem [shape: f32[1,32], index: 7, kind: input, shape index: {}]   ;;  %s1029_s8 = inlined_call_operand.vmem [shape: f32[1,32], index: 8, kind: input, shape index: {}]   ;;  %s1030_s9 = inlined_call_operand.hbm [shape: bf16[32,64], index: 9, kind: input, shape index: {}]   ;;  %s1031_s10 = inlined_call_operand.vmem [shape: f32[1,64], index: 10, kind: input, shape index: {}]   ;;  %s1032_s11 = inlined_call_operand.vmem [shape: bf16[64,32], index: 11, kind: input, shape index: {}]   ;;  %s1033_s12 = inlined_call_operand.vmem [shape: f32[1,32], index: 12, kind: input, shape index: {}]   ;;  %s1034_s13 = inlined_call_operand.vmem [shape: f32[1,32], index: 13, kind: input, shape index: {}]   ;;  %s1035_s14 = inlined_call_operand.vmem [shape: f32[1,32], index: 14, kind: input, shape index: {}]   ;;  %s1036_s15 = inlined_call_operand.hbm [shape: f32[2,8,32], index: 15, kind: output, shape index: {0}]   ;;  %s1037_s16 = inlined_call_operand.hbm [shape: f32[2,1,32], index: 16, kind: output, shape index: {1}]  }
   0x1   :  { %1039 = sst [smem:[#allocation11_spill]] %s1021_s0 }
   0x2   :  { %22 = vsyncpa [#allocation3], 0 }
   0x3   :  { %23 = vsyncpa [#allocation4], 0 }
   0x4   :  { %24 = vsyncpa [#allocation7], 0  ;;  %s47_s23 = sshll.u32 %s1030_s9, 4  ;;  %s802_s24 = smov [#allocation2]   ;;  %s48_s23 = int_to_ptr.hbm [resolvable:$true] %s47_s23 }
   0x5   :  { %s49_s25 = sshll.u32 %s802_s24, 4  ;;  %s803_s26 = smov 64   ;;  %s50_s25 = int_to_ptr.vmem [resolvable:$true] %s49_s25 }
   0x6   :  { %s804_s27 = smov 4  }
   0x7   :  { %55 = dma.hbm_to_vmem [thread:$0]  %s48_s23, 256, %s50_s25, [#allocation3], %s803_s26, %s803_s26, %s804_s27  }
   0x8   :  { %796 = dma.done.wait [#allocation3], 256  }
   0x9   :  { %797 = vsyncadd [#allocation3], 4294967040  ;;  %v664_v0 = vld [vmem:[%s1024_s3 + $0x8] sm:$0xff]  ;;  %v663_v1 = vld [vmem:[%s1024_s3] sm:$0xff]  ;;  %s1040_s18 = sld [smem:[#allocation11_spill]]  ;;  %vm94_vm0 = vcmask 261120  }
   0xa   :  { %104 = vmatpush.bf16.msra.mxu0 %v664_v0  ;;  %v688_v5 = vld [vmem:[%s1025_s4] ss:$0 sm:$0xff]  ;;  %s805_s22 = smov 96   ;;  %vm174_vm1 = vcmask 64512   ;;  %v690_v29 = vld [vmem:[%s1022_s1 + $0x1] ss:$0 sm:$0xff] }
   0xb   :  { %v689_v24 = vld [vmem:[%s1022_s1] ss:$0 sm:$0xff]  ;;  %vm204_vm2 = vcmask 1043456   ;;  %v666_v56 = vld [vmem:[%s1026_s5 + $0x8] sm:$0xff]  ;;  %vm438_vm10 = vcmask 523264   ;;  %vm544_vm11 = vcmask 7168  }
   0xc   :  { %v665_v57 = vld [vmem:[%s1026_s5] sm:$0xff]  ;;  %s584_s30 = sshll.u32 %s1036_s15, 4  ;;  %s809_s5 = smov 128   ;;  %s585_s30 = int_to_ptr.hbm [resolvable:$true] %s584_s30 }
   0xd   :  { %v691_v63 = vld [vmem:[%s1027_s6] ss:$0 sm:$0xff]  ;;  %s810_s6 = smov 8   ;;  %s811_s15 = smov [#allocation6]  }
   0xe   :  { %105 = vmatpush.bf16.msra.mxu0 %v663_v1  ;;  %s595_s0 = sshll.u32 %s811_s15, 4  ;;  %s813_s19 = smov 1   ;;  %s596_s0 = int_to_ptr.vmem [resolvable:$true] %s595_s0 }
   0xf   :  { %v913_v2 = vld [vmem:[%s1040_s18] sm:$0xff]  ;;  %v918_v3 = vld [vmem:[%s1040_s18 + $0x8] sm:$0xff]  ;;  %s597_s18 = sshll.u32 %s1037_s16, 4  ;;  %s598_s18 = int_to_ptr.hbm [resolvable:$true] %s597_s18 }
  0x10   :  { %v73_v4 = vpack.c.bf16 %v918_v3, %v913_v2 }
  0x12   :  { %623 = vmatmul.msk.bf16.vlgmr.msra.gmra.mxu0 %vm94_vm0, %v73_v4 }
  0x13   :  { %272 = vmatpush.bf16.msrb.mxu0 %v666_v56  ;;  %v672_v56 = vld [vmem:[%s1032_s11 + $0x18] sm:$0xff] }
  0x17   :  { %273 = vmatpush.bf16.msrb.mxu0 %v665_v57  ;;  %v671_v57 = vld [vmem:[%s1032_s11 + $0x10] sm:$0xff] }
  0x8f   :  { %v107_v6 = vpop.f32.mrf.mxu0 }
  0x90   :  { %v108_v7 = vadd.f32 %v688_v5, %v107_v6 }
  0x92   :  { %v116_v8 = vpack.c.bf16 %v108_v7, %v108_v7  ;;  %v112_v18 = vmul.f32 0.17677669, %v108_v7 }
  0x94   :  { %v127_v9 = vunpack.c.l.b16 %v116_v8  ;;  %v114_v19 = vpack.c.bf16 %v112_v18, %v112_v18 }
  0x96   :  { %v128_v10 = vpack.c.b16 %v127_v9, %v127_v9 }
  0x97   :  { %v109_v11 = vpop.f32.mrf.mxu0 }
  0x98   :  { %v110_v12 = vadd.f32 %v688_v5, %v109_v11  ;;  %129 = vrot.lane.b32.xlu0 %v128_v10, %s805_s22 }
  0x9a   :  { %v117_v13 = vpack.c.bf16 %v110_v12, %v110_v12  ;;  %v113_v22 = vmul.f32 0.17677669, %v110_v12 }
  0x9c   :  { %v151_v14 = vunpack.c.l.b16 %v117_v13  ;;  %v115_v23 = vpack.c.bf16 %v113_v22, %v113_v22 }
  0x9e   :  { %v152_v15 = vpack.c.b16 %v151_v14, %v151_v14 }
  0xa0   :  { %153 = vrot.lane.b32.xlu0 %v152_v15, %s805_s22 }
 0x10a   :  { %v130_v16 = vpop.permute.xlu0 %129 }
 0x10b   :  { %v135_v17 = vsel %vm94_vm0, %v130_v16, 0 }
 0x10c   :  { %144 = vmatpush.bf16.xpose.msra.mxu1 %v135_v17 }
 0x112   :  { %v154_v20 = vpop.permute.xlu0 %153 }
 0x113   :  { %624 = vmatmul.msk.bf16.vlgmr.msra.gmra.mxu1 %vm94_vm0, %v114_v19  ;;  %v159_v21 = vsel %vm94_vm0, %v154_v20, 0 }
 0x114   :  { %168 = vmatpush.bf16.xpose.msra.mxu2 %v159_v21 }
 0x11b   :  { %625 = vmatmul.msk.bf16.vlgmr.msra.gmra.mxu2 %vm94_vm0, %v115_v23 }
 0x11c   :  { %446 = vmatpush.bf16.msrb.mxu2 %v672_v56 }
 0x120   :  { %447 = vmatpush.bf16.msrb.mxu2 %v671_v57 }
 0x190   :  { %v146_v25 = vpop.f32.mrf.mxu1 }
 0x191   :  { %v147_v26 = vadd.f32 %v689_v24, %v146_v25  ;;  %v668_v25 = vld [vmem:[#allocation2 + $0x8] sm:$0xff] }
 0x192   :  { %375 = vmatpush.bf16.msrb.mxu1 %v668_v25 }
 0x193   :  { %v175_v27 = vsel %vm174_vm1, %v147_v26, -inf }
 0x194   :  { %176 = vmax.xlane.f32.xlu1 %v175_v27  ;;  %v667_v27 = vld [vmem:[#allocation2] sm:$0xff] }
 0x196   :  { %376 = vmatpush.bf16.msrb.mxu1 %v667_v27 }
 0x198   :  { %v148_v28 = vpop.f32.mrf.mxu1 }
 0x19e   :  { %v170_v30 = vpop.f32.mrf.mxu2 }
 0x19f   :  { %v171_v31 = vadd.f32 %v690_v29, %v170_v30 }
 0x1a1   :  { %v178_v32 = vsel %vm174_vm1, %v171_v31, -inf }
 0x1a2   :  { %179 = vmax.xlane.f32.xlu1 %v178_v32 }
 0x1a6   :  { %v172_v33 = vpop.f32.mrf.mxu2 }
 0x1bb   :  { %221 = vrot.lane.b32.xlu1 %v152_v15, %s803_s26 }
 0x207   :  { %v177_v34 = vpop.xlane.xlu1 %176 }
 0x208   :  { %v181_v35 = vsub.f32 %v147_v26, %v177_v34 }
 0x20a   :  { %v183_v36 = vmul.f32 1.442695, %v181_v35 }
 0x20c   :  { %698 = vpow2.f32 %v183_v36 }
 0x212   :  { %v699_v37 = vpop.eup %698 }
 0x213   :  { %v187_v38 = vsel %vm174_vm1, %v699_v37, 0.0 }
 0x214   :  { %188 = vadd.xlane.f32.xlu2 %v187_v38 }
 0x215   :  { %v180_v39 = vpop.xlane.xlu1 %179 }
 0x216   :  { %v182_v40 = vsub.f32 %v171_v31, %v180_v39 }
 0x218   :  { %v185_v41 = vmul.f32 1.442695, %v182_v40 }
 0x21a   :  { %700 = vpow2.f32 %v185_v41 }
 0x220   :  { %v701_v42 = vpop.eup %700 }
 0x221   :  { %v190_v43 = vsel %vm174_vm1, %v701_v42, 0.0 }
 0x222   :  { %191 = vadd.xlane.f32.xlu0 %v190_v43 }
 0x22c   :  { %199 = vrot.lane.b32.xlu2 %v128_v10, %s803_s26  ;;  %v806_v10 = vmov 32.0  }
 0x22d   :  { %v222_v46 = vpop.permute.xlu1 %221 }
 0x22e   :  { %v227_v50 = vsel %vm204_vm2, %v222_v46, 0  ;;  %v692_v46 = vld [vmem:[%s1028_s7] ss:$0 sm:$0xff]  ;;  %s812_s7 = smov 16  }
 0x287   :  { %v189_v44 = vpop.xlane.xlu2 %188 }
 0x288   :  { %702 = vrcp.f32 %v189_v44 }
 0x28e   :  { %v703_v45 = vpop.eup %702 }
 0x28f   :  { %v200_v47 = vpop.permute.xlu2 %199  ;;  %v195_v48 = vmul.f32 %v703_v45, %v699_v37 }
 0x290   :  { %v206_v49 = vsel %vm204_vm2, %v200_v47, 0 }
 0x291   :  { %215 = vmatpush.bf16.msra.mxu3 %v206_v49  ;;  %v197_v51 = vpack.c.bf16 %v195_v48, %v195_v48 }
 0x294   :  { %626 = vmatmul.msk.bf16.vlgmr.msra.gmra.mxu3 %vm174_vm1, %v197_v51  ;;  %v693_v51 = vld [vmem:[%s1029_s8] ss:$0 sm:$0xff] }
 0x295   :  { %236 = vmatpush.bf16.msrb.mxu3 %v227_v50  ;;  %v192_v52 = vpop.xlane.xlu0 %191 }
 0x296   :  { %704 = vrcp.f32 %v192_v52 }
 0x297   :  { %706 = vrcp.f32 %v806_v10 }
 0x29c   :  { %v705_v53 = vpop.eup %704 }
 0x29d   :  { %v196_v54 = vmul.f32 %v705_v53, %v701_v42  ;;  %v707_v11 = vpop.eup %706 }
 0x29e   :  { %v291_v12 = vmul.f32 32.0, %v707_v11  ;;  %vm295_vm3 = vweird.f32 %v707_v11 }
 0x29f   :  { %v198_v55 = vpack.c.bf16 %v196_v54, %v196_v54 }
 0x2a0   :  { %v292_v13 = vsub.f32 1.0, %v291_v12 }
 0x2a2   :  { %v293_v14 = vmul.f32 %v707_v11, %v292_v13 }
 0x2a4   :  { %627 = vmatmul.msk.bf16.vlgmr.msrb.gmra.mxu3 %vm174_vm1, %v198_v55  ;;  %v294_v15 = vadd.f32 %v707_v11, %v293_v14 }
 0x2a6   :  { %v958_v16 = vsel %vm295_vm3, %v707_v11, %v294_v15  ;;  %vm575_vm3 = vcmask 253952  }
 0x317   :  { %v217_v58 = vpop.f32.mrf.mxu3 }
 0x31f   :  { %v219_v59 = vpop.f32.mrf.mxu3 }
 0x320   :  { %v694_v59 = vld [vmem:[%s1031_s10] ss:$0 sm:$0xff] }
 0x327   :  { %v238_v60 = vpop.f32.mrf.mxu3 }
 0x328   :  { %v242_v61 = vpack.c.bf16 %v238_v60, %v217_v58  ;;  %v670_v58 = vld [vmem:[%s1032_s11 + $0x8] sm:$0xff]  ;;  %v669_v60 = vld [vmem:[%s1032_s11] sm:$0xff] }
 0x329   :  { %448 = vmatpush.bf16.msrb.mxu2 %v670_v58 }
 0x32a   :  { %636 = vmatmul.msk.bf16.vlgmr.msrb.gmra.mxu0 %vm94_vm0, %v242_v61 }
 0x32d   :  { %449 = vmatpush.bf16.msrb.mxu2 %v669_v60 }
 0x32f   :  { %v240_v62 = vpop.f32.mrf.mxu3 }
 0x3a7   :  { %v275_v0 = vpop.f32.mrf.mxu0 }
 0x3a8   :  { %v276_v1 = vadd.f32 %v691_v63, %v275_v0 }
 0x3aa   :  { %v280_v4 = vadd.f32 %v276_v1, %v913_v2 }
 0x3ac   :  { %v284_v5 = vsel %vm94_vm0, %v280_v4, 0.0 }
 0x3ad   :  { %285 = vadd.xlane.f32.xlu2 %v284_v5 }
 0x3af   :  { %v277_v6 = vpop.f32.mrf.mxu0 }
 0x3b0   :  { %v278_v7 = vadd.f32 %v691_v63, %v277_v6 }
 0x3b2   :  { %v281_v8 = vadd.f32 %v278_v7, %v918_v3 }
 0x3b4   :  { %v287_v9 = vsel %vm94_vm0, %v281_v8, 0.0 }
 0x3b5   :  { %288 = vadd.xlane.f32.xlu1 %v287_v9 }
 0x420   :  { %v286_v2 = vpop.xlane.xlu2 %285 }
 0x421   :  { %v297_v17 = vmul.f32 %v958_v16, %v286_v2 }
 0x423   :  { %v299_v18 = vsub.f32 %v280_v4, %v297_v17 }
 0x425   :  { %v301_v19 = vmul.f32 %v299_v18, %v299_v18 }
 0x427   :  { %v303_v3 = vsel %vm94_vm0, %v301_v19, 0.0 }
 0x428   :  { %v289_v20 = vpop.xlane.xlu1 %288  ;;  %304 = vadd.xlane.f32.xlu0 %v303_v3 }
 0x429   :  { %v298_v21 = vmul.f32 %v958_v16, %v289_v20 }
 0x42b   :  { %v300_v22 = vsub.f32 %v281_v8, %v298_v21  ;;  %v695_v21 = vld [vmem:[%s1033_s12] ss:$0 sm:$0xff] }
 0x42d   :  { %v302_v23 = vmul.f32 %v300_v22, %v300_v22 }
 0x42f   :  { %v306_v24 = vsel %vm94_vm0, %v302_v23, 0.0 }
 0x430   :  { %307 = vadd.xlane.f32.xlu0 %v306_v24 }
 0x49b   :  { %v305_v26 = vpop.xlane.xlu0 %304 }
 0x49c   :  { %v309_v28 = vmul.f32 %v305_v26, %v958_v16 }
 0x49e   :  { %v311_v29 = vadd.f32 1e-12, %v309_v28 }
 0x4a0   :  { %708 = vrsqrt.f32 %v311_v29  ;;  %vm319_vm5 = vweird.f32 %v311_v29 }
 0x4a3   :  { %v308_v30 = vpop.xlane.xlu0 %307 }
 0x4a4   :  { %v310_v31 = vmul.f32 %v308_v30, %v958_v16  ;;  %v517_v30 = vld [vmem:[%s1023_s2 + $0x8] sm:$0xff] }
 0x4a6   :  { %v709_v32 = vpop.eup %708  ;;  %v312_v33 = vadd.f32 1e-12, %v310_v31  ;;  %v807_v31 = vmov 0  }
 0x4a7   :  { %v314_v34 = vmul.f32 %v709_v32, %v311_v29  ;;  %vm320_vm4 = vweird.f32 %v709_v32  ;;  %685 = vset.pattern.permute.xlu1 %v807_v31  ;;  %687 = vset.pattern.permute.xlu0 %v807_v31 }
 0x4a8   :  { %710 = vrsqrt.f32 %v312_v33  ;;  %vm321_vm6 = vmor %vm319_vm5, %vm320_vm4  ;;  %vm329_vm8 = vweird.f32 %v312_v33  ;;  %686 = vset.pattern.permute.xlu2 %v807_v31 }
 0x4a9   :  { %v315_v35 = vmul.f32 %v709_v32, %v314_v34 }
 0x4ab   :  { %v316_v36 = vmul.f32 0.5, %v315_v35 }
 0x4ad   :  { %v317_v37 = vsub.f32 1.5, %v316_v36 }
 0x4ae   :  { %v711_v38 = vpop.eup %710 }
 0x4af   :  { %v318_v39 = vmul.f32 %v709_v32, %v317_v37  ;;  %v324_v40 = vmul.f32 %v711_v38, %v312_v33  ;;  %vm330_vm7 = vweird.f32 %v711_v38  ;;  %v552_v33 = vsel %vm544_vm11, %v517_v30, 0.0 }
 0x4b0   :  { %vm331_vm9 = vmor %vm329_vm8, %vm330_vm7  ;;  %v553_v34 = vrot.slane %v552_v33, 4 }
 0x4b1   :  { %v325_v41 = vmul.f32 %v711_v38, %v324_v40  ;;  %v322_v42 = vsel %vm321_vm6, %v709_v32, %v318_v39  ;;  %v516_v32 = vld [vmem:[%s1023_s2] sm:$0xff] }
 0x4b2   :  { %v333_v45 = vmul.f32 %v322_v42, %v299_v18  ;;  %520 = vperm.xlu1 %685, %v516_v32   ;;  %v554_v35 = vadd.f32 %v553_v34, %v552_v33  ;;  %v545_v39 = vsel %vm544_vm11, %v516_v32, 0.0 }
 0x4b3   :  { %v326_v43 = vmul.f32 0.5, %v325_v41  ;;  %v546_v42 = vrot.slane %v545_v39, 4 }
 0x4b4   :  { %v338_v50 = vmul.f32 %v692_v46, %v333_v45  ;;  %v555_v36 = vrot.slane %v554_v35, 2 }
 0x4b5   :  { %v327_v44 = vsub.f32 1.5, %v326_v43 }
 0x4b6   :  { %v343_v53 = vadd.f32 %v693_v51, %v338_v50  ;;  %v556_v37 = vadd.f32 %v555_v36, %v554_v35 }
 0x4b7   :  { %v328_v47 = vmul.f32 %v711_v38, %v327_v44 }
 0x4b9   :  { %v332_v48 = vsel %vm331_vm9, %v711_v38, %v328_v47  ;;  %v557_v38 = vrot.slane %v556_v37, 1 }
 0x4ba   :  { %v334_v49 = vmul.f32 %v332_v48, %v300_v22 }
 0x4bb   :  { %v558_v40 = vadd.f32 %v557_v38, %v556_v37 }
 0x4bc   :  { %v339_v52 = vmul.f32 %v692_v46, %v334_v49  ;;  %v547_v46 = vadd.f32 %v546_v42, %v545_v39 }
 0x4bd   :  { %v560_v41 = vmax.f32 %v558_v40, 1e-09 }
 0x4be   :  { %v344_v54 = vadd.f32 %v693_v51, %v339_v52  ;;  %v548_v50 = vrot.slane %v547_v46, 2 }
 0x4c0   :  { %v345_v55 = vpack.c.bf16 %v344_v54, %v343_v53 }
 0x4c2   :  { %645 = vmatmul.msk.bf16.vlgmr.msrb.gmra.mxu1 %vm94_vm0, %v345_v55 }
 0x53f   :  { %v378_v61 = vpop.f32.mrf.mxu1 }
 0x540   :  { %v379_v62 = vadd.f32 %v694_v59, %v378_v61 }
 0x542   :  { %v383_v63 = vmul.f32 %v379_v62, %v379_v62 }
 0x544   :  { %v385_v0 = vmul.f32 %v383_v63, %v379_v62 }
 0x546   :  { %v387_v1 = vmul.f32 0.044715, %v385_v0 }
 0x547   :  { %v380_v4 = vpop.f32.mrf.mxu1 }
 0x548   :  { %v389_v5 = vadd.f32 %v387_v1, %v379_v62  ;;  %v381_v6 = vadd.f32 %v694_v59, %v380_v4 }
 0x54a   :  { %v391_v7 = vmul.f32 0.7978846, %v389_v5  ;;  %v384_v8 = vmul.f32 %v381_v6, %v381_v6 }
 0x54c   :  { %v386_v9 = vmul.f32 %v384_v8, %v381_v6  ;;  %712 = vtanh.f32 %v391_v7 }
 0x54e   :  { %v388_v10 = vmul.f32 0.044715, %v386_v9 }
 0x550   :  { %v390_v11 = vadd.f32 %v388_v10, %v381_v6 }
 0x552   :  { %v392_v12 = vmul.f32 0.7978846, %v390_v11  ;;  %v713_v13 = vpop.eup %712 }
 0x553   :  { %v395_v14 = vadd.f32 1.0, %v713_v13  ;;  %v696_v13 = vld [vmem:[%s1034_s13] ss:$0 sm:$0xff]  ;;  %s808_s13 = smov [#allocation5]  }
 0x554   :  { %714 = vtanh.f32 %v392_v12  ;;  %s582_s28 = sshll.u32 %s808_s13, 4  ;;  %s583_s28 = int_to_ptr.vmem [resolvable:$true] %s582_s28 }
 0x555   :  { %v397_v2 = vmul.f32 0.5, %v395_v14  ;;  %716 = vrcp.f32 %v560_v41 }
 0x557   :  { %v399_v19 = vmul.f32 %v397_v2, %v379_v62 }
 0x55a   :  { %v715_v15 = vpop.eup %714 }
 0x55b   :  { %v396_v17 = vadd.f32 1.0, %v715_v15  ;;  %v717_v48 = vpop.eup %716 }
 0x55c   :  { %570 = vperm.xlu1 %685, %v717_v48  }
 0x55d   :  { %v398_v18 = vmul.f32 0.5, %v396_v17 }
 0x55f   :  { %v400_v3 = vmul.f32 %v398_v18, %v381_v6 }
 0x561   :  { %v401_v20 = vpack.c.bf16 %v400_v3, %v399_v19  ;;  %v521_v3 = vpop.permute.xlu1 %520 }
 0x563   :  { %662 = vmatmul.msk.bf16.vlgmr.msrb.gmra.mxu2 %vm438_vm10, %v401_v20 }
 0x5e6   :  { %v451_v22 = vpop.f32.mrf.mxu2 }
 0x5e7   :  { %v452_v23 = vadd.f32 %v695_v21, %v451_v22 }
 0x5e9   :  { %v456_v24 = vadd.f32 %v452_v23, %v343_v53 }
 0x5eb   :  { %v460_v25 = vsel %vm94_vm0, %v456_v24, 0.0 }
 0x5ec   :  { %461 = vadd.xlane.f32.xlu2 %v460_v25 }
 0x5ee   :  { %v453_v26 = vpop.f32.mrf.mxu2 }
 0x5ef   :  { %v454_v27 = vadd.f32 %v695_v21, %v453_v26 }
 0x5f1   :  { %v457_v28 = vadd.f32 %v454_v27, %v344_v54  ;;  %v549_v54 = vadd.f32 %v548_v50, %v547_v46 }
 0x5f3   :  { %v463_v29 = vsel %vm94_vm0, %v457_v28, 0.0  ;;  %v550_v57 = vrot.slane %v549_v54, 1 }
 0x5f4   :  { %464 = vadd.xlane.f32.xlu0 %v463_v29 }
 0x5f5   :  { %v551_v58 = vadd.f32 %v550_v57, %v549_v54 }
 0x5f7   :  { %v559_v59 = vmax.f32 %v551_v58, 1e-09 }
 0x5f9   :  { %718 = vrcp.f32 %v559_v59 }
 0x5ff   :  { %v719_v60 = vpop.eup %718 }
 0x65f   :  { %v462_v43 = vpop.xlane.xlu2 %461 }
 0x660   :  { %v466_v44 = vmul.f32 %v462_v43, %v958_v16 }
 0x662   :  { %v468_v45 = vsub.f32 %v456_v24, %v466_v44 }
 0x664   :  { %v470_v47 = vmul.f32 %v468_v45, %v468_v45 }
 0x666   :  { %v472_v49 = vsel %vm94_vm0, %v470_v47, 0.0 }
 0x667   :  { %v465_v51 = vpop.xlane.xlu0 %464  ;;  %473 = vadd.xlane.f32.xlu2 %v472_v49 }
 0x668   :  { %v467_v52 = vmul.f32 %v465_v51, %v958_v16 }
 0x66a   :  { %v469_v53 = vsub.f32 %v457_v28, %v467_v52 }
 0x66c   :  { %v471_v55 = vmul.f32 %v469_v53, %v469_v53 }
 0x66e   :  { %v475_v56 = vsel %vm94_vm0, %v471_v55, 0.0 }
 0x66f   :  { %476 = vadd.xlane.f32.xlu0 %v475_v56 }
 0x67f   :  { %525 = vperm.xlu2 %686, %v517_v30  }
 0x683   :  { %565 = vperm.xlu0 %687, %v719_v60  }
 0x6da   :  { %v474_v61 = vpop.xlane.xlu2 %473 }
 0x6db   :  { %v478_v62 = vmul.f32 %v474_v61, %v958_v16 }
 0x6dd   :  { %v480_v63 = vadd.f32 1e-12, %v478_v62 }
 0x6df   :  { %720 = vrsqrt.f32 %v480_v63  ;;  %vm488_vm13 = vweird.f32 %v480_v63 }
 0x6e2   :  { %v477_v0 = vpop.xlane.xlu0 %476  ;;  %v526_v29 = vpop.permute.xlu2 %525 }
 0x6e3   :  { %v479_v1 = vmul.f32 %v477_v0, %v958_v16  ;;  %v697_v16 = vld [vmem:[%s1035_s14] ss:$0 sm:$0xff] }
 0x6e5   :  { %v721_v4 = vpop.eup %720  ;;  %v481_v5 = vadd.f32 1e-12, %v479_v1 }
 0x6e6   :  { %v483_v6 = vmul.f32 %v721_v4, %v480_v63  ;;  %vm489_vm12 = vweird.f32 %v721_v4 }
 0x6e7   :  { %722 = vrsqrt.f32 %v481_v5  ;;  %vm490_vm14 = vmor %vm488_vm13, %vm489_vm12  ;;  %vm498_vm1 = vweird.f32 %v481_v5 }
 0x6e8   :  { %v484_v7 = vmul.f32 %v721_v4, %v483_v6 }
 0x6ea   :  { %v485_v8 = vmul.f32 0.5, %v484_v7 }
 0x6ec   :  { %v486_v9 = vsub.f32 1.5, %v485_v8 }
 0x6ed   :  { %v723_v10 = vpop.eup %722 }
 0x6ee   :  { %v487_v11 = vmul.f32 %v721_v4, %v486_v9  ;;  %v493_v12 = vmul.f32 %v723_v10, %v481_v5  ;;  %vm499_vm15 = vweird.f32 %v723_v10 }
 0x6ef   :  { %vm500_vm2 = vmor %vm498_vm1, %vm499_vm15 }
 0x6f0   :  { %v494_v14 = vmul.f32 %v723_v10, %v493_v12  ;;  %v491_v15 = vsel %vm490_vm14, %v721_v4, %v487_v11 }
 0x6f1   :  { %v502_v2 = vmul.f32 %v491_v15, %v468_v45  ;;  %v571_v45 = vpop.permute.xlu1 %570 }
 0x6f2   :  { %v495_v17 = vmul.f32 0.5, %v494_v14 }
 0x6f3   :  { %v507_v18 = vmul.f32 %v696_v13, %v502_v2 }
 0x6f4   :  { %v496_v19 = vsub.f32 1.5, %v495_v17 }
 0x6f5   :  { %v512_v20 = vadd.f32 %v697_v16, %v507_v18  ;;  %v566_v37 = vpop.permute.xlu0 %565 }
 0x6f6   :  { %v497_v21 = vmul.f32 %v723_v10, %v496_v19 }
 0x6f7   :  { %514 = vst.msk [vmem:[#allocation5] sm:$0xff] %vm94_vm0, %v512_v20  ;;  %v528_v22 = vmul.f32 %v521_v3, %v512_v20 }
 0x6f8   :  { %v501_v23 = vsel %vm500_vm2, %v723_v10, %v497_v21 }
 0x6f9   :  { %v530_v24 = vsel %vm94_vm0, %v528_v22, 0.0  ;;  %v503_v25 = vmul.f32 %v501_v23, %v469_v53 }
 0x6fa   :  { %v531_v26 = vrot.slane %v530_v24, 4 }
 0x6fb   :  { %v508_v27 = vmul.f32 %v696_v13, %v503_v25 }
 0x6fc   :  { %v532_v28 = vadd.f32 %v531_v26, %v530_v24 }
 0x6fd   :  { %v513_v30 = vadd.f32 %v697_v16, %v508_v27 }
 0x6fe   :  { %v533_v31 = vrot.slane %v532_v28, 2 }
 0x6ff   :  { %515 = vst.msk [vmem:[#allocation5 + $0x8] sm:$0xff] %vm94_vm0, %v513_v30  ;;  %v529_v32 = vmul.f32 %v526_v29, %v513_v30 }
 0x700   :  { %v534_v33 = vadd.f32 %v533_v31, %v532_v28  ;;  %590 = dma.vmem_to_hbm [thread:$0]  %s583_s28, 256, %s585_s30, [#allocation4], %s809_s5, %s809_s5, %s810_s6  }
 0x701   :  { %v537_v34 = vsel %vm94_vm0, %v529_v32, 0.0 }
 0x702   :  { %v538_v35 = vrot.slane %v537_v34, 4  ;;  %v535_v36 = vrot.slane %v534_v33, 1 }
 0x704   :  { %v539_v38 = vadd.f32 %v538_v35, %v537_v34  ;;  %v536_v39 = vadd.f32 %v535_v36, %v534_v33 }
 0x706   :  { %v540_v40 = vrot.slane %v539_v38, 2  ;;  %v573_v41 = vmul.f32 %v566_v37, %v536_v39 }
 0x708   :  { %v541_v42 = vadd.f32 %v540_v40, %v539_v38  ;;  %576 = vst.msk [vmem:[#allocation6] sm:$0x1] %vm575_vm3, %v573_v41 }
 0x70a   :  { %v542_v43 = vrot.slane %v541_v42, 1 }
 0x70c   :  { %v543_v44 = vadd.f32 %v542_v43, %v541_v42 }
 0x70e   :  { %v574_v46 = vmul.f32 %v571_v45, %v543_v44 }
 0x710   :  { %577 = vst.msk [vmem:[#allocation6 + $0x1] sm:$0x1] %vm575_vm3, %v574_v46 }
 0x711   :  { %603 = dma.vmem_to_hbm [thread:$0]  %s596_s0, 32, %s598_s18, [#allocation7], %s812_s7, %s812_s7, %s813_s19  }
 0x712   :  { %798 = dma.done.wait [#allocation4], 256  }
 0x713   :  { %799 = vsyncadd [#allocation4], 4294967040 }
 0x714   :  { %800 = dma.done.wait [#allocation7], 32  }
 0x715   :  { %801 = vsyncadd [#allocation7], 4294967264 }
 0x716   :  { %612 = vsyncpa [#allocation3], 1 }
 0x717   :  { %613 = vsyncpa [#allocation4], 1 }
 0x718   :  { %614 = vsyncpa [#allocation7], 1 }

// kernel: tpu_custom_call.1
= control target key start
LH: loop header
LB: loop body
LE: loop exit
PB: predicated region body
PF: predicated region fallthrough
CT: control target
= control target key end

     0   :  { %s1021_s0 = inlined_call_operand.vmem [shape: f32[2,8,32], index: 0, kind: input, shape index: {}]   ;;  %s1022_s1 = inlined_call_operand.vmem [shape: f32[2,1,8], index: 1, kind: input, shape index: {}]   ;;  %s1023_s2 = inlined_call_operand.vmem [shape: f32[2,8,1], index: 2, kind: input, shape index: {}]   ;;  %s1024_s3 = inlined_call_operand.vmem [shape: bf16[32,96], index: 3, kind: input, shape index: {}]   ;;  %s1025_s4 = inlined_call_operand.vmem [shape: f32[1,96], index: 4, kind: input, shape index: {}]   ;;  %s1026_s5 = inlined_call_operand.vmem [shape: bf16[32,32], index: 5, kind: input, shape index: {}]   ;;  %s1027_s6 = inlined_call_operand.vmem [shape: f32[1,32], index: 6, kind: input, shape index: {}]   ;;  %s1028_s7 = inlined_call_operand.vmem [shape: f32[1,32], index: 7, kind: input, shape index: {}]   ;;  %s1029_s8 = inlined_call_operand.vmem [shape: f32[1,32], index: 8, kind: input, shape index: {}]   ;;  %s1030_s9 = inlined_call_operand.hbm [shape: bf16[32,64], index: 9, kind: input, shape index: {}]   ;;  %s1031_s10 = inlined_call_operand.vmem [shape: f32[1,64], index: 10, kind: input, shape index: {}]   ;;  %s1032_s11 = inlined_call_operand.vmem [shape: bf16[64,32], index: 11, kind: input, shape index: {}]   ;;  %s1033_s12 = inlined_call_operand.vmem [shape: f32[1,32], index: 12, kind: input, shape index: {}]   ;;  %s1034_s13 = inlined_call_operand.vmem [shape: f32[1,32], index: 13, kind: input, shape index: {}]   ;;  %s1035_s14 = inlined_call_operand.vmem [shape: f32[1,32], index: 14, kind: input, shape index: {}]   ;;  %s1036_s15 = inlined_call_operand.hbm [shape: f32[2,8,32], index: 15, kind: output, shape index: {0}]   ;;  %s1037_s16 = inlined_call_operand.hbm [shape: f32[2,1,32], index: 16, kind: output, shape index: {1}]  }
   0x1   :  { %1039 = sst [smem:[#allocation11_spill]] %s1021_s0 }
   0x2   :  { %22 = vsyncpa [#allocation3], 0 }
   0x3   :  { %23 = vsyncpa [#allocation4], 0 }
   0x4   :  { %24 = vsyncpa [#allocation7], 0  ;;  %s47_s23 = sshll.u32 %s1030_s9, 4  ;;  %s802_s24 = smov [#allocation2]   ;;  %s48_s23 = int_to_ptr.hbm [resolvable:$true] %s47_s23 }
   0x5   :  { %s49_s25 = sshll.u32 %s802_s24, 4  ;;  %s803_s26 = smov 64   ;;  %s50_s25 = int_to_ptr.vmem [resolvable:$true] %s49_s25 }
   0x6   :  { %s804_s27 = smov 4  }
   0x7   :  { %55 = dma.hbm_to_vmem [thread:$0]  %s48_s23, 256, %s50_s25, [#allocation3], %s803_s26, %s803_s26, %s804_s27  }
   0x8   :  { %796 = dma.done.wait [#allocation3], 256  }
   0x9   :  { %797 = vsyncadd [#allocation3], 4294967040  ;;  %v664_v0 = vld [vmem:[%s1024_s3 + $0x8] sm:$0xff]  ;;  %v663_v1 = vld [vmem:[%s1024_s3] sm:$0xff]  ;;  %s1040_s18 = sld [smem:[#allocation11_spill]]  ;;  %vm94_vm0 = vcmask 261120  }
   0xa   :  { %104 = vmatpush.bf16.msra.mxu0 %v664_v0  ;;  %v688_v5 = vld [vmem:[%s1025_s4] ss:$0 sm:$0xff]  ;;  %s805_s22 = smov 96   ;;  %vm174_vm1 = vcmask 64512   ;;  %v690_v29 = vld [vmem:[%s1022_s1 + $0x1] ss:$0 sm:$0xff] }
   0xb   :  { %v689_v24 = vld [vmem:[%s1022_s1] ss:$0 sm:$0xff]  ;;  %vm204_vm2 = vcmask 1043456   ;;  %v666_v56 = vld [vmem:[%s1026_s5 + $0x8] sm:$0xff]  ;;  %vm438_vm10 = vcmask 523264   ;;  %vm544_vm11 = vcmask 7168  }
   0xc   :  { %v665_v57 = vld [vmem:[%s1026_s5] sm:$0xff]  ;;  %s584_s30 = sshll.u32 %s1036_s15, 4  ;;  %s809_s5 = smov 128   ;;  %s585_s30 = int_to_ptr.hbm [resolvable:$true] %s584_s30 }
   0xd   :  { %v691_v63 = vld [vmem:[%s1027_s6] ss:$0 sm:$0xff]  ;;  %s810_s6 = smov 8   ;;  %s811_s15 = smov [#allocation6]  }
   0xe   :  { %105 = vmatpush.bf16.msra.mxu0 %v663_v1  ;;  %s595_s0 = sshll.u32 %s811_s15, 4  ;;  %s813_s19 = smov 1   ;;  %s596_s0 = int_to_ptr.vmem [resolvable:$true] %s595_s0 }
   0xf   :  { %v913_v2 = vld [vmem:[%s1040_s18] sm:$0xff]  ;;  %v918_v3 = vld [vmem:[%s1040_s18 + $0x8] sm:$0xff]  ;;  %s597_s18 = sshll.u32 %s1037_s16, 4  ;;  %s598_s18 = int_to_ptr.hbm [resolvable:$true] %s597_s18 }
  0x10   :  { %v73_v4 = vpack.c.bf16 %v918_v3, %v913_v2 }
  0x12   :  { %623 = vmatmul.msk.bf16.vlgmr.msra.gmra.mxu0 %vm94_vm0, %v73_v4 }
  0x13   :  { %272 = vmatpush.bf16.msrb.mxu0 %v666_v56  ;;  %v672_v56 = vld [vmem:[%s1032_s11 + $0x18] sm:$0xff] }
  0x17   :  { %273 = vmatpush.bf16.msrb.mxu0 %v665_v57  ;;  %v671_v57 = vld [vmem:[%s1032_s11 + $0x10] sm:$0xff] }
  0x8f   :  { %v107_v6 = vpop.f32.mrf.mxu0 }
  0x90   :  { %v108_v7 = vadd.f32 %v688_v5, %v107_v6 }
  0x92   :  { %v116_v8 = vpack.c.bf16 %v108_v7, %v108_v7  ;;  %v112_v18 = vmul.f32 0.17677669, %v108_v7 }
  0x94   :  { %v127_v9 = vunpack.c.l.b16 %v116_v8  ;;  %v114_v19 = vpack.c.bf16 %v112_v18, %v112_v18 }
  0x96   :  { %v128_v10 = vpack.c.b16 %v127_v9, %v127_v9 }
  0x97   :  { %v109_v11 = vpop.f32.mrf.mxu0 }
  0x98   :  { %v110_v12 = vadd.f32 %v688_v5, %v109_v11  ;;  %129 = vrot.lane.b32.xlu0 %v128_v10, %s805_s22 }
  0x9a   :  { %v117_v13 = vpack.c.bf16 %v110_v12, %v110_v12  ;;  %v113_v22 = vmul.f32 0.17677669, %v110_v12 }
  0x9c   :  { %v151_v14 = vunpack.c.l.b16 %v117_v13  ;;  %v115_v23 = vpack.c.bf16 %v113_v22, %v113_v22 }
  0x9e   :  { %v152_v15 = vpack.c.b16 %v151_v14, %v151_v14 }
  0xa0   :  { %153 = vrot.lane.b32.xlu0 %v152_v15, %s805_s22 }
 0x10a   :  { %v130_v16 = vpop.permute.xlu0 %129 }
 0x10b   :  { %v135_v17 = vsel %vm94_vm0, %v130_v16, 0 }
 0x10c   :  { %144 = vmatpush.bf16.xpose.msra.mxu1 %v135_v17 }
 0x112   :  { %v154_v20 = vpop.permute.xlu0 %153 }
 0x113   :  { %624 = vmatmul.msk.bf16.vlgmr.msra.gmra.mxu1 %vm94_vm0, %v114_v19  ;;  %v159_v21 = vsel %vm94_vm0, %v154_v20, 0 }
 0x114   :  { %168 = vmatpush.bf16.xpose.msra.mxu2 %v159_v21 }
 0x11b   :  { %625 = vmatmul.msk.bf16.vlgmr.msra.gmra.mxu2 %vm94_vm0, %v115_v23 }
 0x11c   :  { %446 = vmatpush.bf16.msrb.mxu2 %v672_v56 }
 0x120   :  { %447 = vmatpush.bf16.msrb.mxu2 %v671_v57 }
 0x190   :  { %v146_v25 = vpop.f32.mrf.mxu1 }
 0x191   :  { %v147_v26 = vadd.f32 %v689_v24, %v146_v25  ;;  %v668_v25 = vld [vmem:[#allocation2 + $0x8] sm:$0xff] }
 0x192   :  { %375 = vmatpush.bf16.msrb.mxu1 %v668_v25 }
 0x193   :  { %v175_v27 = vsel %vm174_vm1, %v147_v26, -inf }
 0x194   :  { %176 = vmax.xlane.f32.xlu1 %v175_v27  ;;  %v667_v27 = vld [vmem:[#allocation2] sm:$0xff] }
 0x196   :  { %376 = vmatpush.bf16.msrb.mxu1 %v667_v27 }
 0x198   :  { %v148_v28 = vpop.f32.mrf.mxu1 }
 0x19e   :  { %v170_v30 = vpop.f32.mrf.mxu2 }
 0x19f   :  { %v171_v31 = vadd.f32 %v690_v29, %v170_v30 }
 0x1a1   :  { %v178_v32 = vsel %vm174_vm1, %v171_v31, -inf }
 0x1a2   :  { %179 = vmax.xlane.f32.xlu1 %v178_v32 }
 0x1a6   :  { %v172_v33 = vpop.f32.mrf.mxu2 }
 0x1bb   :  { %221 = vrot.lane.b32.xlu1 %v152_v15, %s803_s26 }
 0x207   :  { %v177_v34 = vpop.xlane.xlu1 %176 }
 0x208   :  { %v181_v35 = vsub.f32 %v147_v26, %v177_v34 }
 0x20a   :  { %v183_v36 = vmul.f32 1.442695, %v181_v35 }
 0x20c   :  { %698 = vpow2.f32 %v183_v36 }
 0x212   :  { %v699_v37 = vpop.eup %698 }
 0x213   :  { %v187_v38 = vsel %vm174_vm1, %v699_v37, 0.0 }
 0x214   :  { %188 = vadd.xlane.f32.xlu2 %v187_v38 }
 0x215   :  { %v180_v39 = vpop.xlane.xlu1 %179 }
 0x216   :  { %v182_v40 = vsub.f32 %v171_v31, %v180_v39 }
 0x218   :  { %v185_v41 = vmul.f32 1.442695, %v182_v40 }
 0x21a   :  { %700 = vpow2.f32 %v185_v41 }
 0x220   :  { %v701_v42 = vpop.eup %700 }
 0x221   :  { %v190_v43 = vsel %vm174_vm1, %v701_v42, 0.0 }
 0x222   :  { %191 = vadd.xlane.f32.xlu0 %v190_v43 }
 0x22c   :  { %199 = vrot.lane.b32.xlu2 %v128_v10, %s803_s26  ;;  %v806_v10 = vmov 32.0  }
 0x22d   :  { %v222_v46 = vpop.permute.xlu1 %221 }
 0x22e   :  { %v227_v50 = vsel %vm204_vm2, %v222_v46, 0  ;;  %v692_v46 = vld [vmem:[%s1028_s7] ss:$0 sm:$0xff]  ;;  %s812_s7 = smov 16  }
 0x287   :  { %v189_v44 = vpop.xlane.xlu2 %188 }
 0x288   :  { %702 = vrcp.f32 %v189_v44 }
 0x28e   :  { %v703_v45 = vpop.eup %702 }
 0x28f   :  { %v200_v47 = vpop.permute.xlu2 %199  ;;  %v195_v48 = vmul.f32 %v703_v45, %v699_v37 }
 0x290   :  { %v206_v49 = vsel %vm204_vm2, %v200_v47, 0 }
 0x291   :  { %215 = vmatpush.bf16.msra.mxu3 %v206_v49  ;;  %v197_v51 = vpack.c.bf16 %v195_v48, %v195_v48 }
 0x294   :  { %626 = vmatmul.msk.bf16.vlgmr.msra.gmra.mxu3 %vm174_vm1, %v197_v51  ;;  %v693_v51 = vld [vmem:[%s1029_s8] ss:$0 sm:$0xff] }
 0x295   :  { %236 = vmatpush.bf16.msrb.mxu3 %v227_v50  ;;  %v192_v52 = vpop.xlane.xlu0 %191 }
 0x296   :  { %704 = vrcp.f32 %v192_v52 }
 0x297   :  { %706 = vrcp.f32 %v806_v10 }
 0x29c   :  { %v705_v53 = vpop.eup %704 }
 0x29d   :  { %v196_v54 = vmul.f32 %v705_v53, %v701_v42  ;;  %v707_v11 = vpop.eup %706 }
 0x29e   :  { %v291_v12 = vmul.f32 32.0, %v707_v11  ;;  %vm295_vm3 = vweird.f32 %v707_v11 }
 0x29f   :  { %v198_v55 = vpack.c.bf16 %v196_v54, %v196_v54 }
 0x2a0   :  { %v292_v13 = vsub.f32 1.0, %v291_v12 }
 0x2a2   :  { %v293_v14 = vmul.f32 %v707_v11, %v292_v13 }
 0x2a4   :  { %627 = vmatmul.msk.bf16.vlgmr.msrb.gmra.mxu3 %vm174_vm1, %v198_v55  ;;  %v294_v15 = vadd.f32 %v707_v11, %v293_v14 }
 0x2a6   :  { %v958_v16 = vsel %vm295_vm3, %v707_v11, %v294_v15  ;;  %vm575_vm3 = vcmask 253952  }
 0x317   :  { %v217_v58 = vpop.f32.mrf.mxu3 }
 0x31f   :  { %v219_v59 = vpop.f32.mrf.mxu3 }
 0x320   :  { %v694_v59 = vld [vmem:[%s1031_s10] ss:$0 sm:$0xff] }
 0x327   :  { %v238_v60 = vpop.f32.mrf.mxu3 }
 0x328   :  { %v242_v61 = vpack.c.bf16 %v238_v60, %v217_v58  ;;  %v670_v58 = vld [vmem:[%s1032_s11 + $0x8] sm:$0xff]  ;;  %v669_v60 = vld [vmem:[%s1032_s11] sm:$0xff] }
 0x329   :  { %448 = vmatpush.bf16.msrb.mxu2 %v670_v58 }
 0x32a   :  { %636 = vmatmul.msk.bf16.vlgmr.msrb.gmra.mxu0 %vm94_vm0, %v242_v61 }
 0x32d   :  { %449 = vmatpush.bf16.msrb.mxu2 %v669_v60 }
 0x32f   :  { %v240_v62 = vpop.f32.mrf.mxu3 }
 0x3a7   :  { %v275_v0 = vpop.f32.mrf.mxu0 }
 0x3a8   :  { %v276_v1 = vadd.f32 %v691_v63, %v275_v0 }
 0x3aa   :  { %v280_v4 = vadd.f32 %v276_v1, %v913_v2 }
 0x3ac   :  { %v284_v5 = vsel %vm94_vm0, %v280_v4, 0.0 }
 0x3ad   :  { %285 = vadd.xlane.f32.xlu2 %v284_v5 }
 0x3af   :  { %v277_v6 = vpop.f32.mrf.mxu0 }
 0x3b0   :  { %v278_v7 = vadd.f32 %v691_v63, %v277_v6 }
 0x3b2   :  { %v281_v8 = vadd.f32 %v278_v7, %v918_v3 }
 0x3b4   :  { %v287_v9 = vsel %vm94_vm0, %v281_v8, 0.0 }
 0x3b5   :  { %288 = vadd.xlane.f32.xlu1 %v287_v9 }
 0x420   :  { %v286_v2 = vpop.xlane.xlu2 %285 }
 0x421   :  { %v297_v17 = vmul.f32 %v958_v16, %v286_v2 }
 0x423   :  { %v299_v18 = vsub.f32 %v280_v4, %v297_v17 }
 0x425   :  { %v301_v19 = vmul.f32 %v299_v18, %v299_v18 }
 0x427   :  { %v303_v3 = vsel %vm94_vm0, %v301_v19, 0.0 }
 0x428   :  { %v289_v20 = vpop.xlane.xlu1 %288  ;;  %304 = vadd.xlane.f32.xlu0 %v303_v3 }
 0x429   :  { %v298_v21 = vmul.f32 %v958_v16, %v289_v20 }
 0x42b   :  { %v300_v22 = vsub.f32 %v281_v8, %v298_v21  ;;  %v695_v21 = vld [vmem:[%s1033_s12] ss:$0 sm:$0xff] }
 0x42d   :  { %v302_v23 = vmul.f32 %v300_v22, %v300_v22 }
 0x42f   :  { %v306_v24 = vsel %vm94_vm0, %v302_v23, 0.0 }
 0x430   :  { %307 = vadd.xlane.f32.xlu0 %v306_v24 }
 0x49b   :  { %v305_v26 = vpop.xlane.xlu0 %304 }
 0x49c   :  { %v309_v28 = vmul.f32 %v305_v26, %v958_v16 }
 0x49e   :  { %v311_v29 = vadd.f32 1e-12, %v309_v28 }
 0x4a0   :  { %708 = vrsqrt.f32 %v311_v29  ;;  %vm319_vm5 = vweird.f32 %v311_v29 }
 0x4a3   :  { %v308_v30 = vpop.xlane.xlu0 %307 }
 0x4a4   :  { %v310_v31 = vmul.f32 %v308_v30, %v958_v16  ;;  %v517_v30 = vld [vmem:[%s1023_s2 + $0x8] sm:$0xff] }
 0x4a6   :  { %v709_v32 = vpop.eup %708  ;;  %v312_v33 = vadd.f32 1e-12, %v310_v31  ;;  %v807_v31 = vmov 0  }
 0x4a7   :  { %v314_v34 = vmul.f32 %v709_v32, %v311_v29  ;;  %vm320_vm4 = vweird.f32 %v709_v32  ;;  %685 = vset.pattern.permute.xlu1 %v807_v31  ;;  %687 = vset.pattern.permute.xlu0 %v807_v31 }
 0x4a8   :  { %710 = vrsqrt.f32 %v312_v33  ;;  %vm321_vm6 = vmor %vm319_vm5, %vm320_vm4  ;;  %vm329_vm8 = vweird.f32 %v312_v33  ;;  %686 = vset.pattern.permute.xlu2 %v807_v31 }
 0x4a9   :  { %v315_v35 = vmul.f32 %v709_v32, %v314_v34 }
 0x4ab   :  { %v316_v36 = vmul.f32 0.5, %v315_v35 }
 0x4ad   :  { %v317_v37 = vsub.f32 1.5, %v316_v36 }
 0x4ae   :  { %v711_v38 = vpop.eup %710 }
 0x4af   :  { %v318_v39 = vmul.f32 %v709_v32, %v317_v37  ;;  %v324_v40 = vmul.f32 %v711_v38, %v312_v33  ;;  %vm330_vm7 = vweird.f32 %v711_v38  ;;  %v552_v33 = vsel %vm544_vm11, %v517_v30, 0.0 }
 0x4b0   :  { %vm331_vm9 = vmor %vm329_vm8, %vm330_vm7  ;;  %v553_v34 = vrot.slane %v552_v33, 4 }
 0x4b1   :  { %v325_v41 = vmul.f32 %v711_v38, %v324_v40  ;;  %v322_v42 = vsel %vm321_vm6, %v709_v32, %v318_v39  ;;  %v516_v32 = vld [vmem:[%s1023_s2] sm:$0xff] }
 0x4b2   :  { %v333_v45 = vmul.f32 %v322_v42, %v299_v18  ;;  %520 = vperm.xlu1 %685, %v516_v32   ;;  %v554_v35 = vadd.f32 %v553_v34, %v552_v33  ;;  %v545_v39 = vsel %vm544_vm11, %v516_v32, 0.0 }
 0x4b3   :  { %v326_v43 = vmul.f32 0.5, %v325_v41  ;;  %v546_v42 = vrot.slane %v545_v39, 4 }
 0x4b4   :  { %v338_v50 = vmul.f32 %v692_v46, %v333_v45  ;;  %v555_v36 = vrot.slane %v554_v35, 2 }
 0x4b5   :  { %v327_v44 = vsub.f32 1.5, %v326_v43 }
 0x4b6   :  { %v343_v53 = vadd.f32 %v693_v51, %v338_v50  ;;  %v556_v37 = vadd.f32 %v555_v36, %v554_v35 }
 0x4b7   :  { %v328_v47 = vmul.f32 %v711_v38, %v327_v44 }
 0x4b9   :  { %v332_v48 = vsel %vm331_vm9, %v711_v38, %v328_v47  ;;  %v557_v38 = vrot.slane %v556_v37, 1 }
 0x4ba   :  { %v334_v49 = vmul.f32 %v332_v48, %v300_v22 }
 0x4bb   :  { %v558_v40 = vadd.f32 %v557_v38, %v556_v37 }
 0x4bc   :  { %v339_v52 = vmul.f32 %v692_v46, %v334_v49  ;;  %v547_v46 = vadd.f32 %v546_v42, %v545_v39 }
 0x4bd   :  { %v560_v41 = vmax.f32 %v558_v40, 1e-09 }
 0x4be   :  { %v344_v54 = vadd.f32 %v693_v51, %v339_v52  ;;  %v548_v50 = vrot.slane %v547_v46, 2 }
 0x4c0   :  { %v345_v55 = vpack.c.bf16 %v344_v54, %v343_v53 }
 0x4c2   :  { %645 = vmatmul.msk.bf16.vlgmr.msrb.gmra.mxu1 %vm94_vm0, %v345_v55 }
 0x53f   :  { %v378_v61 = vpop.f32.mrf.mxu1 }
 0x540   :  { %v379_v62 = vadd.f32 %v694_v59, %v378_v61 }
 0x542   :  { %v383_v63 = vmul.f32 %v379_v62, %v379_v62 }
 0x544   :  { %v385_v0 = vmul.f32 %v383_v63, %v379_v62 }
 0x546   :  { %v387_v1 = vmul.f32 0.044715, %v385_v0 }
 0x547   :  { %v380_v4 = vpop.f32.mrf.mxu1 }
 0x548   :  { %v389_v5 = vadd.f32 %v387_v1, %v379_v62  ;;  %v381_v6 = vadd.f32 %v694_v59, %v380_v4 }
 0x54a   :  { %v391_v7 = vmul.f32 0.7978846, %v389_v5  ;;  %v384_v8 = vmul.f32 %v381_v6, %v381_v6 }
 0x54c   :  { %v386_v9 = vmul.f32 %v384_v8, %v381_v6  ;;  %712 = vtanh.f32 %v391_v7 }
 0x54e   :  { %v388_v10 = vmul.f32 0.044715, %v386_v9 }
 0x550   :  { %v390_v11 = vadd.f32 %v388_v10, %v381_v6 }
 0x552   :  { %v392_v12 = vmul.f32 0.7978846, %v390_v11  ;;  %v713_v13 = vpop.eup %712 }
 0x553   :  { %v395_v14 = vadd.f32 1.0, %v713_v13  ;;  %v696_v13 = vld [vmem:[%s1034_s13] ss:$0 sm:$0xff]  ;;  %s808_s13 = smov [#allocation5]  }
 0x554   :  { %714 = vtanh.f32 %v392_v12  ;;  %s582_s28 = sshll.u32 %s808_s13, 4  ;;  %s583_s28 = int_to_ptr.vmem [resolvable:$true] %s582_s28 }
 0x555   :  { %v397_v2 = vmul.f32 0.5, %v395_v14  ;;  %716 = vrcp.f32 %v560_v41 }
 0x557   :  { %v399_v19 = vmul.f32 %v397_v2, %v379_v62 }
 0x55a   :  { %v715_v15 = vpop.eup %714 }
 0x55b   :  { %v396_v17 = vadd.f32 1.0, %v715_v15  ;;  %v717_v48 = vpop.eup %716 }
 0x55c   :  { %570 = vperm.xlu1 %685, %v717_v48  }
 0x55d   :  { %v398_v18 = vmul.f32 0.5, %v396_v17 }
 0x55f   :  { %v400_v3 = vmul.f32 %v398_v18, %v381_v6 }
 0x561   :  { %v401_v20 = vpack.c.bf16 %v400_v3, %v399_v19  ;;  %v521_v3 = vpop.permute.xlu1 %520 }
 0x563   :  { %662 = vmatmul.msk.bf16.vlgmr.msrb.gmra.mxu2 %vm438_vm10, %v401_v20 }
 0x5e6   :  { %v451_v22 = vpop.f32.mrf.mxu2 }
 0x5e7   :  { %v452_v23 = vadd.f32 %v695_v21, %v451_v22 }
 0x5e9   :  { %v456_v24 = vadd.f32 %v452_v23, %v343_v53 }
 0x5eb   :  { %v460_v25 = vsel %vm94_vm0, %v456_v24, 0.0 }
 0x5ec   :  { %461 = vadd.xlane.f32.xlu2 %v460_v25 }
 0x5ee   :  { %v453_v26 = vpop.f32.mrf.mxu2 }
 0x5ef   :  { %v454_v27 = vadd.f32 %v695_v21, %v453_v26 }
 0x5f1   :  { %v457_v28 = vadd.f32 %v454_v27, %v344_v54  ;;  %v549_v54 = vadd.f32 %v548_v50, %v547_v46 }
 0x5f3   :  { %v463_v29 = vsel %vm94_vm0, %v457_v28, 0.0  ;;  %v550_v57 = vrot.slane %v549_v54, 1 }
 0x5f4   :  { %464 = vadd.xlane.f32.xlu0 %v463_v29 }
 0x5f5   :  { %v551_v58 = vadd.f32 %v550_v57, %v549_v54 }
 0x5f7   :  { %v559_v59 = vmax.f32 %v551_v58, 1e-09 }
 0x5f9   :  { %718 = vrcp.f32 %v559_v59 }
 0x5ff   :  { %v719_v60 = vpop.eup %718 }
 0x65f   :  { %v462_v43 = vpop.xlane.xlu2 %461 }
 0x660   :  { %v466_v44 = vmul.f32 %v462_v43, %v958_v16 }
 0x662   :  { %v468_v45 = vsub.f32 %v456_v24, %v466_v44 }
 0x664   :  { %v470_v47 = vmul.f32 %v468_v45, %v468_v45 }
 0x666   :  { %v472_v49 = vsel %vm94_vm0, %v470_v47, 0.0 }
 0x667   :  { %v465_v51 = vpop.xlane.xlu0 %464  ;;  %473 = vadd.xlane.f32.xlu2 %v472_v49 }
 0x668   :  { %v467_v52 = vmul.f32 %v465_v51, %v958_v16 }
 0x66a   :  { %v469_v53 = vsub.f32 %v457_v28, %v467_v52 }
 0x66c   :  { %v471_v55 = vmul.f32 %v469_v53, %v469_v53 }
 0x66e   :  { %v475_v56 = vsel %vm94_vm0, %v471_v55, 0.0 }
 0x66f   :  { %476 = vadd.xlane.f32.xlu0 %v475_v56 }
 0x67f   :  { %525 = vperm.xlu2 %686, %v517_v30  }
 0x683   :  { %565 = vperm.xlu0 %687, %v719_v60  }
 0x6da   :  { %v474_v61 = vpop.xlane.xlu2 %473 }
 0x6db   :  { %v478_v62 = vmul.f32 %v474_v61, %v958_v16 }
 0x6dd   :  { %v480_v63 = vadd.f32 1e-12, %v478_v62 }
 0x6df   :  { %720 = vrsqrt.f32 %v480_v63  ;;  %vm488_vm13 = vweird.f32 %v480_v63 }
 0x6e2   :  { %v477_v0 = vpop.xlane.xlu0 %476  ;;  %v526_v29 = vpop.permute.xlu2 %525 }
 0x6e3   :  { %v479_v1 = vmul.f32 %v477_v0, %v958_v16  ;;  %v697_v16 = vld [vmem:[%s1035_s14] ss:$0 sm:$0xff] }
 0x6e5   :  { %v721_v4 = vpop.eup %720  ;;  %v481_v5 = vadd.f32 1e-12, %v479_v1 }
 0x6e6   :  { %v483_v6 = vmul.f32 %v721_v4, %v480_v63  ;;  %vm489_vm12 = vweird.f32 %v721_v4 }
 0x6e7   :  { %722 = vrsqrt.f32 %v481_v5  ;;  %vm490_vm14 = vmor %vm488_vm13, %vm489_vm12  ;;  %vm498_vm1 = vweird.f32 %v481_v5 }
 0x6e8   :  { %v484_v7 = vmul.f32 %v721_v4, %v483_v6 }
 0x6ea   :  { %v485_v8 = vmul.f32 0.5, %v484_v7 }
 0x6ec   :  { %v486_v9 = vsub.f32 1.5, %v485_v8 }
 0x6ed   :  { %v723_v10 = vpop.eup %722 }
 0x6ee   :  { %v487_v11 = vmul.f32 %v721_v4, %v486_v9  ;;  %v493_v12 = vmul.f32 %v723_v10, %v481_v5  ;;  %vm499_vm15 = vweird.f32 %v723_v10 }
 0x6ef   :  { %vm500_vm2 = vmor %vm498_vm1, %vm499_vm15 }
 0x6f0   :  { %v494_v14 = vmul.f32 %v723_v10, %v493_v12  ;;  %v491_v15 = vsel %vm490_vm14, %v721_v4, %v487_v11 }
 0x6f1   :  { %v502_v2 = vmul.f32 %v491_v15, %v468_v45  ;;  %v571_v45 = vpop.permute.xlu1 %570 }
 0x6f2   :  { %v495_v17 = vmul.f32 0.5, %v494_v14 }
 0x6f3   :  { %v507_v18 = vmul.f32 %v696_v13, %v502_v2 }
 0x6f4   :  { %v496_v19 = vsub.f32 1.5, %v495_v17 }
 0x6f5   :  { %v512_v20 = vadd.f32 %v697_v16, %v507_v18  ;;  %v566_v37 = vpop.permute.xlu0 %565 }
 0x6f6   :  { %v497_v21 = vmul.f32 %v723_v10, %v496_v19 }
 0x6f7   :  { %514 = vst.msk [vmem:[#allocation5] sm:$0xff] %vm94_vm0, %v512_v20  ;;  %v528_v22 = vmul.f32 %v521_v3, %v512_v20 }
 0x6f8   :  { %v501_v23 = vsel %vm500_vm2, %v723_v10, %v497_v21 }
 0x6f9   :  { %v530_v24 = vsel %vm94_vm0, %v528_v22, 0.0  ;;  %v503_v25 = vmul.f32 %v501_v23, %v469_v53 }
 0x6fa   :  { %v531_v26 = vrot.slane %v530_v24, 4 }
 0x6fb   :  { %v508_v27 = vmul.f32 %v696_v13, %v503_v25 }
 0x6fc   :  { %v532_v28 = vadd.f32 %v531_v26, %v530_v24 }
 0x6fd   :  { %v513_v30 = vadd.f32 %v697_v16, %v508_v27 }
 0x6fe   :  { %v533_v31 = vrot.slane %v532_v28, 2 }
 0x6ff   :  { %515 = vst.msk [vmem:[#allocation5 + $0x8] sm:$0xff] %vm94_vm0, %v513_v30  ;;  %v529_v32 = vmul.f32 %v526_v29, %v513_v30 }
 0x700   :  { %v534_v33 = vadd.f32 %v533_v31, %v532_v28  ;;  %590 = dma.vmem_to_hbm [thread:$0]  %s583_s28, 256, %s585_s30, [#allocation4], %s809_s5, %s809_s5, %s810_s6  }
 0x701   :  { %v537_v34 = vsel %vm94_vm0, %v529_v32, 0.0 }
 0x702   :  { %v538_v35 = vrot.slane %v537_v34, 4  ;;  %v535_v36 = vrot.slane %v534_v33, 1 }
 0x704   :  { %v539_v38 = vadd.f32 %v538_v35, %v537_v34  ;;  %v536_v39 = vadd.f32 %v535_v36, %v534_v33 }
 0x706   :  { %v540_v40 = vrot.slane %v539_v38, 2  ;;  %v573_v41 = vmul.f32 %v566_v37, %v536_v39 }
 0x708   :  { %v541_v42 = vadd.f32 %v540_v40, %v539_v38  ;;  %576 = vst.msk [vmem:[#allocation6] sm:$0x1] %vm575_vm3, %v573_v41 }
 0x70a   :  { %v542_v43 = vrot.slane %v541_v42, 1 }
 0x70c   :  { %v543_v44 = vadd.f32 %v542_v43, %v541_v42 }
 0x70e   :  { %v574_v46 = vmul.f32 %v571_v45, %v543_v44 }
 0x710   :  { %577 = vst.msk [vmem:[#allocation6 + $0x1] sm:$0x1] %vm575_vm3, %v574_v46 }
 0x711   :  { %603 = dma.vmem_to_hbm [thread:$0]  %s596_s0, 32, %s598_s18, [#allocation7], %s812_s7, %s812_s7, %s813_s19  }
 0x712   :  { %798 = dma.done.wait [#allocation4], 256  }
 0x713   :  { %799 = vsyncadd [#allocation4], 4294967040 }
 0x714   :  { %800 = dma.done.wait [#allocation7], 32  }
 0x715   :  { %801 = vsyncadd [#allocation7], 4294967264 }
 0x716   :  { %612 = vsyncpa [#allocation3], 1 }
 0x717   :  { %613 = vsyncpa [#allocation4], 1 }
 0x718   :  { %614 = vsyncpa [#allocation7], 1 }

</bundles_post_ra>
